<compile_context>
chip_gen: v7x
topology: tpu7x:2x2x1
jax: 0.10.0
libtpu: 0.0.40
codegen_flags: <defaults>
</compile_context>

<pallas_src>
import jax
import jax.numpy as jnp
from jax.experimental import pallas as pl
from jax.experimental.pallas import tpu as pltpu

IN_DIM = 38
HID = 64
OUT_DIM = 1


def _round_up(n, m):
    return ((n + m - 1) // m) * m


def extrader_kernel(x_ref, w1_ref, b1_ref, w2_ref, b2_ref,
                    w3_ref, b3_ref, w4_ref, b4_ref, o_ref):
    """Fused 4-layer MLP on one (tb, IN_DIM) batch tile.

    x arrives f32 and is cast to bf16 in-kernel (near-free VPU op) right before the first dot.
    W1..W3 run on the MXU in bf16 with f32 accumulation; bias-add / tanh stay f32.
    The 64->1 layer is a VPU multiply + lane reduction; its (tb, 1) result is reshaped to the
    output block's shape (lane-dense (tb//128, 128) in the fast path).
    """
    x = x_ref[...].astype(jnp.bfloat16)                                # (tb, IN_DIM) bf16
    h = jnp.tanh(jnp.dot(x, w1_ref[...],
                         preferred_element_type=jnp.float32) + b1_ref[...])
    h = jnp.tanh(jnp.dot(h.astype(jnp.bfloat16), w2_ref[...],
                         preferred_element_type=jnp.float32) + b2_ref[...])
    h = jnp.tanh(jnp.dot(h.astype(jnp.bfloat16), w3_ref[...],
                         preferred_element_type=jnp.float32) + b3_ref[...])
    # (tb, HID) * (1, HID) -> lane-reduce -> (tb, 1); f32 on the VPU/XLU.
    y = jnp.sum(h * w4_ref[...], axis=-1, keepdims=True) + b4_ref[...]
    o_ref[...] = y.reshape(o_ref.shape)


def _pick_tile(B, tb):
    """Returns (tile_rows, padded_batch)."""
    b128 = _round_up(B, 128)
    if b128 < 2048:
        # Small batch: one tile spanning the whole (128-rounded) batch.  The output block then
        # equals the full output array, so any block height is legal.
        return b128, b128
    # Large batch: tiles are multiples of 1024 so the lane-dense output block (tb//128, 128)
    # keeps its sublane dim a multiple of 8, and are clamped to <= half the batch so the grid
    # has >= 2 steps for v7x's two TensorCores.
    tb = max(int(tb), 1024)
    tb = max(1024, (min(tb, b128 // 2) // 1024) * 1024)
    return tb, _round_up(b128, tb)


def _forward_impl(x, kp, *, tb, lane_dense):
    B = x.shape[0]
    tb_eff, Bp = _pick_tile(B, tb)
    grid = Bp // tb_eff

    if lane_dense:
        # Lane-dense output: (Bp//128, 128) f32, written with full unmasked vector stores.
        out_shape = jax.ShapeDtypeStruct((Bp // 128, 128), jnp.float32)
        out_spec = pl.BlockSpec((tb_eff // 128, 128), lambda i: (i, 0))
    else:
        # Narrow fallback layout (matches the original kernel).
        out_shape = jax.ShapeDtypeStruct((Bp, OUT_DIM), jnp.float32)
        out_spec = pl.BlockSpec((tb_eff, OUT_DIM), lambda i: (i, 0))

    full = lambda a: pl.BlockSpec(a.shape, lambda i: (0, 0))   # VMEM-resident across steps

    cost = pl.CostEstimate(
        flops=2 * Bp * (IN_DIM * HID + 2 * HID * HID + HID),
        transcendentals=3 * HID * Bp,
        bytes_accessed=(4 * Bp * IN_DIM + 4 * Bp                      # f32 x in, f32 y out
                        + 2 * (IN_DIM * HID + 2 * HID * HID)          # bf16 weights
                        + 4 * (4 * HID + 1)),                         # f32 biases + w4
    )

    out = pl.pallas_call(
        extrader_kernel,
        out_shape=out_shape,
        grid_spec=pltpu.PrefetchScalarGridSpec(
            num_scalar_prefetch=0,
            grid=(grid,),
            in_specs=[
                pl.BlockSpec((tb_eff, IN_DIM), lambda i: (i, 0)),     # batch tile of f32 x
                full(kp["w1"]), full(kp["b1"]),
                full(kp["w2"]), full(kp["b2"]),
                full(kp["w3"]), full(kp["b3"]),
                full(kp["w4"]), full(kp["b4"]),
            ],
            out_specs=out_spec,
        ),
        compiler_params=pltpu.CompilerParams(
            dimension_semantics=("parallel",)),   # shards batch tiles across v7x's 2 TCs
        cost_estimate=cost,
    )(x, kp["w1"], kp["b1"], kp["w2"], kp["b2"],
      kp["w3"], kp["b3"], kp["w4"], kp["b4"])

    # (Bp//128,128) -> (Bp,1) is a free metadata reshape outside the kernel; then drop padding.
    return out.reshape(Bp, OUT_DIM)[:B]


_LANE_DENSE_OK = None   # resolved once, at the first forward call


def extrader_forward(x, kernel_params, *, tb=4096):
    """x: (B, 38) float32; kernel_params: output of prepare_params()."""
    global _LANE_DENSE_OK
    if _LANE_DENSE_OK is None:
        try:
            out = _forward_impl(x, kernel_params, tb=tb, lane_dense=True)
            jax.block_until_ready(out)
            _LANE_DENSE_OK = True
            return out
        except Exception:
            # Fallback if this Mosaic version cannot lower the (tb,1)->(tb//128,128) relayout;
            # functionally identical, just the narrow-output store path of the original kernel.
            _LANE_DENSE_OK = False
    return _forward_impl(x, kernel_params, tb=tb, lane_dense=_LANE_DENSE_OK)


def init_params(key):
    """f32 params mimicking nn.Linear's uniform(-1/sqrt(fan_in), 1/sqrt(fan_in)) init.
    Weights stored (in_features, out_features); biases stored (1, out_features)."""
    dims = [(IN_DIM, HID), (HID, HID), (HID, HID), (HID, OUT_DIM)]
    params = {}
    keys = jax.random.split(key, 2 * len(dims))
    for idx, (fan_in, fan_out) in enumerate(dims):
        bound = 1.0 / jnp.sqrt(fan_in)
        w = jax.random.uniform(keys[2 * idx], (fan_in, fan_out),
                               minval=-bound, maxval=bound, dtype=jnp.float32)
        b = jax.random.uniform(keys[2 * idx + 1], (1, fan_out),
                               minval=-bound, maxval=bound, dtype=jnp.float32)
        params[f"w{idx + 1}"] = w
        params[f"b{idx + 1}"] = b
    return params


def prepare_params(params):
    """One-time cast/reshape to kernel-ready layouts (hoisted out of the per-call path):
    bf16 MXU weights for layers 1-3, f32 biases, and the 64->1 layer as an f32 row vector."""
    return {
        "w1": params["w1"].astype(jnp.bfloat16),
        "b1": params["b1"].reshape(1, HID).astype(jnp.float32),
        "w2": params["w2"].astype(jnp.bfloat16),
        "b2": params["b2"].reshape(1, HID).astype(jnp.float32),
        "w3": params["w3"].astype(jnp.bfloat16),
        "b3": params["b3"].reshape(1, HID).astype(jnp.float32),
        "w4": params["w4"].reshape(1, HID).astype(jnp.float32),
        "b4": params["b4"].reshape(1, OUT_DIM).astype(jnp.float32),
    }


def reference_forward_bf16(x, params):
    """Reference mirroring the kernel's numerics (bf16 MXU operands, f32 accumulation,
    f32 elementwise final layer) for a tight-tolerance comparison."""
    bf = jnp.bfloat16
    dot = lambda a, w: jnp.dot(a.astype(bf), w.astype(bf),
                               preferred_element_type=jnp.float32)
    h = jnp.tanh(dot(x, params["w1"]) + params["b1"])
    h = jnp.tanh(dot(h, params["w2"]) + params["b2"])
    h = jnp.tanh(dot(h, params["w3"]) + params["b3"])
    return jnp.sum(h * params["w4"].reshape(1, HID), axis=-1, keepdims=True) \
        + params["b4"].reshape(1, OUT_DIM)


def reference_forward_f32(x, params):
    """True-f32 reference matching the PyTorch module (Dropout is identity at inference)."""
    hi = jax.lax.Precision.HIGHEST
    dot = lambda a, w: jnp.dot(a, w, precision=hi)
    h = jnp.tanh(dot(x, params["w1"]) + params["b1"])
    h = jnp.tanh(dot(h, params["w2"]) + params["b2"])
    h = jnp.tanh(dot(h, params["w3"]) + params["b3"])
    return dot(h, params["w4"]) + params["b4"]


if __name__ == "__main__":
    key = jax.random.PRNGKey(0)
    k_params, k_small, k_big = jax.random.split(key, 3)
    params = init_params(k_params)
    kparams = prepare_params(params)   # hoisted one-time weight cast/reshape

    # (a) B=200: single-tile path, batch not a multiple of 128 (partial edge block, no jnp.pad).
    # (b) B=2500: multi-tile path (tile=1024, 3 grid steps) exercising the >=2-step clamp,
    #     multi-block lane-dense output, and a partial last tile.
    for B, k in ((200, k_small), (2500, k_big)):
        x = jax.random.normal(k, (B, IN_DIM), dtype=jnp.float32)
        out = jax.block_until_ready(extrader_forward(x, kparams, tb=4096))
        assert out.shape == (B, OUT_DIM)

        ref_bf = reference_forward_bf16(x, params)
        ref_f32 = reference_forward_f32(x, params)
        err_bf = float(jnp.max(jnp.abs(out - ref_bf)))
        err_f32 = float(jnp.max(jnp.abs(out - ref_f32)))
        assert jnp.allclose(out, ref_bf, atol=2e-3, rtol=2e-3), ("bf16-ref mismatch", B, err_bf)
        assert jnp.allclose(out, ref_f32, atol=5e-2, rtol=5e-2), ("f32-ref mismatch", B, err_f32)

    print("KERNEL_OK")
</pallas_src>

<mosaic_0001>
module attributes {stable_mosaic.version = 11 : i64} {
  func.func @extrader_kernel(%arg0: i32, %arg1: memref<256x38xf32, #tpu.memory_space<vmem>>, %arg2: memref<38x64xbf16, #tpu.memory_space<vmem>>, %arg3: memref<1x64xf32, #tpu.memory_space<vmem>>, %arg4: memref<64x64xbf16, #tpu.memory_space<vmem>>, %arg5: memref<1x64xf32, #tpu.memory_space<vmem>>, %arg6: memref<64x64xbf16, #tpu.memory_space<vmem>>, %arg7: memref<1x64xf32, #tpu.memory_space<vmem>>, %arg8: memref<1x64xf32, #tpu.memory_space<vmem>>, %arg9: memref<1x1xf32, #tpu.memory_space<vmem>>, %arg10: memref<2x128xf32, #tpu.memory_space<vmem>>) attributes {dimension_semantics = [#tpu.dimension_semantics<parallel>], iteration_bounds = array<i64: 1>, scalar_prefetch = 0 : i64, scratch_operands = 0 : i64, tpu.core_type = #tpu.core_type<tc>, window_params = [{transform_indices = @transform_0, window_bounds = array<i64: 256, 38>}, {pipeline_mode = #tpu.pipeline_mode<synchronous>, transform_indices = @transform_1, window_bounds = array<i64: 38, 64>}, {pipeline_mode = #tpu.pipeline_mode<synchronous>, transform_indices = @transform_2, window_bounds = array<i64: 1, 64>}, {pipeline_mode = #tpu.pipeline_mode<synchronous>, transform_indices = @transform_3, window_bounds = array<i64: 64, 64>}, {pipeline_mode = #tpu.pipeline_mode<synchronous>, transform_indices = @transform_4, window_bounds = array<i64: 1, 64>}, {pipeline_mode = #tpu.pipeline_mode<synchronous>, transform_indices = @transform_5, window_bounds = array<i64: 64, 64>}, {pipeline_mode = #tpu.pipeline_mode<synchronous>, transform_indices = @transform_6, window_bounds = array<i64: 1, 64>}, {pipeline_mode = #tpu.pipeline_mode<synchronous>, transform_indices = @transform_7, window_bounds = array<i64: 1, 64>}, {pipeline_mode = #tpu.pipeline_mode<synchronous>, transform_indices = @transform_8, window_bounds = array<i64: 1, 1>}, {transform_indices = @transform_9, window_bounds = array<i64: 2, 128>}]} {
    %c0 = arith.constant 0 : index
    %c0_0 = arith.constant 0 : index
    %0 = vector.load %arg1[%c0, %c0_0] : memref<256x38xf32, #tpu.memory_space<vmem>>, vector<256x38xf32>
    %1 = arith.truncf %0 : vector<256x38xf32> to vector<256x38xbf16>
    %c0_1 = arith.constant 0 : index
    %c0_2 = arith.constant 0 : index
    %2 = vector.load %arg2[%c0_1, %c0_2] : memref<38x64xbf16, #tpu.memory_space<vmem>>, vector<38x64xbf16>
    %cst = arith.constant dense<0.000000e+00> : vector<256x64xf32>
    %3 = tpu.matmul %1, %2, %cst {dimension_numbers = #tpu.dot_dimension_numbers<[1], [0], [0], [1], [0, 0, 1, 1], [], []>} : vector<256x38xbf16>, vector<38x64xbf16>, vector<256x64xf32> -> vector<256x64xf32>
    %c0_3 = arith.constant 0 : index
    %c0_4 = arith.constant 0 : index
    %4 = vector.load %arg3[%c0_3, %c0_4] : memref<1x64xf32, #tpu.memory_space<vmem>>, vector<1x64xf32>
    %5 = vector.broadcast %4 : vector<1x64xf32> to vector<256x64xf32>
    %6 = arith.addf %3, %5 : vector<256x64xf32>
    %7 = math.tanh %6 : vector<256x64xf32>
    %8 = arith.truncf %7 : vector<256x64xf32> to vector<256x64xbf16>
    %c0_5 = arith.constant 0 : index
    %c0_6 = arith.constant 0 : index
    %9 = vector.load %arg4[%c0_5, %c0_6] : memref<64x64xbf16, #tpu.memory_space<vmem>>, vector<64x64xbf16>
    %cst_7 = arith.constant dense<0.000000e+00> : vector<256x64xf32>
    %10 = tpu.matmul %8, %9, %cst_7 {dimension_numbers = #tpu.dot_dimension_numbers<[1], [0], [0], [1], [0, 0, 1, 1], [], []>} : vector<256x64xbf16>, vector<64x64xbf16>, vector<256x64xf32> -> vector<256x64xf32>
    %c0_8 = arith.constant 0 : index
    %c0_9 = arith.constant 0 : index
    %11 = vector.load %arg5[%c0_8, %c0_9] : memref<1x64xf32, #tpu.memory_space<vmem>>, vector<1x64xf32>
    %12 = vector.broadcast %11 : vector<1x64xf32> to vector<256x64xf32>
    %13 = arith.addf %10, %12 : vector<256x64xf32>
    %14 = math.tanh %13 : vector<256x64xf32>
    %15 = arith.truncf %14 : vector<256x64xf32> to vector<256x64xbf16>
    %c0_10 = arith.constant 0 : index
    %c0_11 = arith.constant 0 : index
    %16 = vector.load %arg6[%c0_10, %c0_11] : memref<64x64xbf16, #tpu.memory_space<vmem>>, vector<64x64xbf16>
    %cst_12 = arith.constant dense<0.000000e+00> : vector<256x64xf32>
    %17 = tpu.matmul %15, %16, %cst_12 {dimension_numbers = #tpu.dot_dimension_numbers<[1], [0], [0], [1], [0, 0, 1, 1], [], []>} : vector<256x64xbf16>, vector<64x64xbf16>, vector<256x64xf32> -> vector<256x64xf32>
    %c0_13 = arith.constant 0 : index
    %c0_14 = arith.constant 0 : index
    %18 = vector.load %arg7[%c0_13, %c0_14] : memref<1x64xf32, #tpu.memory_space<vmem>>, vector<1x64xf32>
    %19 = vector.broadcast %18 : vector<1x64xf32> to vector<256x64xf32>
    %20 = arith.addf %17, %19 : vector<256x64xf32>
    %21 = math.tanh %20 : vector<256x64xf32>
    %c0_15 = arith.constant 0 : index
    %c0_16 = arith.constant 0 : index
    %22 = vector.load %arg8[%c0_15, %c0_16] : memref<1x64xf32, #tpu.memory_space<vmem>>, vector<1x64xf32>
    %23 = vector.broadcast %22 : vector<1x64xf32> to vector<256x64xf32>
    %24 = arith.mulf %21, %23 : vector<256x64xf32>
    %cst_17 = arith.constant dense<0.000000e+00> : vector<256xf32>
    %25 = vector.multi_reduction <add>, %24, %cst_17 [1] : vector<256x64xf32> to vector<256xf32>
    %26 = vector.shape_cast %25 : vector<256xf32> to vector<256x1xf32>
    %c0_18 = arith.constant 0 : index
    %c0_19 = arith.constant 0 : index
    %27 = vector.load %arg9[%c0_18, %c0_19] : memref<1x1xf32, #tpu.memory_space<vmem>>, vector<1x1xf32>
    %28 = vector.broadcast %27 : vector<1x1xf32> to vector<256x1xf32>
    %29 = arith.addf %26, %28 : vector<256x1xf32>
    %30 = vector.shape_cast %29 : vector<256x1xf32> to vector<2x128xf32>
    %c0_20 = arith.constant 0 : index
    %c0_21 = arith.constant 0 : index
    %31 = vector.load %arg10[%c0_20, %c0_21] : memref<2x128xf32, #tpu.memory_space<vmem>>, vector<2x128xf32>
    tpu.vector_store %arg10[%c0_20, %c0_21], %30 {strides = array<i32>} : memref<2x128xf32, #tpu.memory_space<vmem>>, vector<2x128xf32>,
    return
  }
  func.func @transform_0(%arg0: i32) -> (i32, i32) {
    %c0_i32 = arith.constant 0 : i32
    %c0_i32_0 = arith.constant 0 : i32
    return %arg0, %c0_i32 : i32, i32
  }
  func.func @transform_1(%arg0: i32) -> (i32, i32) {
    %c0_i32 = arith.constant 0 : i32
    %c0_i32_0 = arith.constant 0 : i32
    %c0_i32_1 = arith.constant 0 : i32
    return %c0_i32, %c0_i32_0 : i32, i32
  }
  func.func @transform_2(%arg0: i32) -> (i32, i32) {
    %c0_i32 = arith.constant 0 : i32
    %c0_i32_0 = arith.constant 0 : i32
    %c0_i32_1 = arith.constant 0 : i32
    return %c0_i32, %c0_i32_0 : i32, i32
  }
  func.func @transform_3(%arg0: i32) -> (i32, i32) {
    %c0_i32 = arith.constant 0 : i32
    %c0_i32_0 = arith.constant 0 : i32
    %c0_i32_1 = arith.constant 0 : i32
    return %c0_i32, %c0_i32_0 : i32, i32
  }
  func.func @transform_4(%arg0: i32) -> (i32, i32) {
    %c0_i32 = arith.constant 0 : i32
    %c0_i32_0 = arith.constant 0 : i32
    %c0_i32_1 = arith.constant 0 : i32
    return %c0_i32, %c0_i32_0 : i32, i32
  }
  func.func @transform_5(%arg0: i32) -> (i32, i32) {
    %c0_i32 = arith.constant 0 : i32
    %c0_i32_0 = arith.constant 0 : i32
    %c0_i32_1 = arith.constant 0 : i32
    return %c0_i32, %c0_i32_0 : i32, i32
  }
  func.func @transform_6(%arg0: i32) -> (i32, i32) {
    %c0_i32 = arith.constant 0 : i32
    %c0_i32_0 = arith.constant 0 : i32
    %c0_i32_1 = arith.constant 0 : i32
    return %c0_i32, %c0_i32_0 : i32, i32
  }
  func.func @transform_7(%arg0: i32) -> (i32, i32) {
    %c0_i32 = arith.constant 0 : i32
    %c0_i32_0 = arith.constant 0 : i32
    %c0_i32_1 = arith.constant 0 : i32
    return %c0_i32, %c0_i32_0 : i32, i32
  }
  func.func @transform_8(%arg0: i32) -> (i32, i32) {
    %c0_i32 = arith.constant 0 : i32
    %c0_i32_0 = arith.constant 0 : i32
    %c0_i32_1 = arith.constant 0 : i32
    return %c0_i32, %c0_i32_0 : i32, i32
  }
  func.func @transform_9(%arg0: i32) -> (i32, i32) {
    %c0_i32 = arith.constant 0 : i32
    %c0_i32_0 = arith.constant 0 : i32
    return %arg0, %c0_i32 : i32, i32
  }
}

module attributes {stable_mosaic.version = 11 : i64} {
  func.func @extrader_kernel(%arg0: i32, %arg1: memref<256x38xf32, #tpu.memory_space<vmem>>, %arg2: memref<38x64xbf16, #tpu.memory_space<vmem>>, %arg3: memref<1x64xf32, #tpu.memory_space<vmem>>, %arg4: memref<64x64xbf16, #tpu.memory_space<vmem>>, %arg5: memref<1x64xf32, #tpu.memory_space<vmem>>, %arg6: memref<64x64xbf16, #tpu.memory_space<vmem>>, %arg7: memref<1x64xf32, #tpu.memory_space<vmem>>, %arg8: memref<1x64xf32, #tpu.memory_space<vmem>>, %arg9: memref<1x1xf32, #tpu.memory_space<vmem>>, %arg10: memref<256x1xf32, #tpu.memory_space<vmem>>) attributes {dimension_semantics = [#tpu.dimension_semantics<parallel>], iteration_bounds = array<i64: 1>, scalar_prefetch = 0 : i64, scratch_operands = 0 : i64, tpu.core_type = #tpu.core_type<tc>, window_params = [{transform_indices = @transform_0, window_bounds = array<i64: 256, 38>}, {pipeline_mode = #tpu.pipeline_mode<synchronous>, transform_indices = @transform_1, window_bounds = array<i64: 38, 64>}, {pipeline_mode = #tpu.pipeline_mode<synchronous>, transform_indices = @transform_2, window_bounds = array<i64: 1, 64>}, {pipeline_mode = #tpu.pipeline_mode<synchronous>, transform_indices = @transform_3, window_bounds = array<i64: 64, 64>}, {pipeline_mode = #tpu.pipeline_mode<synchronous>, transform_indices = @transform_4, window_bounds = array<i64: 1, 64>}, {pipeline_mode = #tpu.pipeline_mode<synchronous>, transform_indices = @transform_5, window_bounds = array<i64: 64, 64>}, {pipeline_mode = #tpu.pipeline_mode<synchronous>, transform_indices = @transform_6, window_bounds = array<i64: 1, 64>}, {pipeline_mode = #tpu.pipeline_mode<synchronous>, transform_indices = @transform_7, window_bounds = array<i64: 1, 64>}, {pipeline_mode = #tpu.pipeline_mode<synchronous>, transform_indices = @transform_8, window_bounds = array<i64: 1, 1>}, {transform_indices = @transform_9, window_bounds = array<i64: 256, 1>}]} {
    %c0 = arith.constant 0 : index
    %c0_0 = arith.constant 0 : index
    %0 = vector.load %arg1[%c0, %c0_0] : memref<256x38xf32, #tpu.memory_space<vmem>>, vector<256x38xf32>
    %1 = arith.truncf %0 : vector<256x38xf32> to vector<256x38xbf16>
    %c0_1 = arith.constant 0 : index
    %c0_2 = arith.constant 0 : index
    %2 = vector.load %arg2[%c0_1, %c0_2] : memref<38x64xbf16, #tpu.memory_space<vmem>>, vector<38x64xbf16>
    %cst = arith.constant dense<0.000000e+00> : vector<256x64xf32>
    %3 = tpu.matmul %1, %2, %cst {dimension_numbers = #tpu.dot_dimension_numbers<[1], [0], [0], [1], [0, 0, 1, 1], [], []>} : vector<256x38xbf16>, vector<38x64xbf16>, vector<256x64xf32> -> vector<256x64xf32>
    %c0_3 = arith.constant 0 : index
    %c0_4 = arith.constant 0 : index
    %4 = vector.load %arg3[%c0_3, %c0_4] : memref<1x64xf32, #tpu.memory_space<vmem>>, vector<1x64xf32>
    %5 = vector.broadcast %4 : vector<1x64xf32> to vector<256x64xf32>
    %6 = arith.addf %3, %5 : vector<256x64xf32>
    %7 = math.tanh %6 : vector<256x64xf32>
    %8 = arith.truncf %7 : vector<256x64xf32> to vector<256x64xbf16>
    %c0_5 = arith.constant 0 : index
    %c0_6 = arith.constant 0 : index
    %9 = vector.load %arg4[%c0_5, %c0_6] : memref<64x64xbf16, #tpu.memory_space<vmem>>, vector<64x64xbf16>
    %cst_7 = arith.constant dense<0.000000e+00> : vector<256x64xf32>
    %10 = tpu.matmul %8, %9, %cst_7 {dimension_numbers = #tpu.dot_dimension_numbers<[1], [0], [0], [1], [0, 0, 1, 1], [], []>} : vector<256x64xbf16>, vector<64x64xbf16>, vector<256x64xf32> -> vector<256x64xf32>
    %c0_8 = arith.constant 0 : index
    %c0_9 = arith.constant 0 : index
    %11 = vector.load %arg5[%c0_8, %c0_9] : memref<1x64xf32, #tpu.memory_space<vmem>>, vector<1x64xf32>
    %12 = vector.broadcast %11 : vector<1x64xf32> to vector<256x64xf32>
    %13 = arith.addf %10, %12 : vector<256x64xf32>
    %14 = math.tanh %13 : vector<256x64xf32>
    %15 = arith.truncf %14 : vector<256x64xf32> to vector<256x64xbf16>
    %c0_10 = arith.constant 0 : index
    %c0_11 = arith.constant 0 : index
    %16 = vector.load %arg6[%c0_10, %c0_11] : memref<64x64xbf16, #tpu.memory_space<vmem>>, vector<64x64xbf16>
    %cst_12 = arith.constant dense<0.000000e+00> : vector<256x64xf32>
    %17 = tpu.matmul %15, %16, %cst_12 {dimension_numbers = #tpu.dot_dimension_numbers<[1], [0], [0], [1], [0, 0, 1, 1], [], []>} : vector<256x64xbf16>, vector<64x64xbf16>, vector<256x64xf32> -> vector<256x64xf32>
    %c0_13 = arith.constant 0 : index
    %c0_14 = arith.constant 0 : index
    %18 = vector.load %arg7[%c0_13, %c0_14] : memref<1x64xf32, #tpu.memory_space<vmem>>, vector<1x64xf32>
    %19 = vector.broadcast %18 : vector<1x64xf32> to vector<256x64xf32>
    %20 = arith.addf %17, %19 : vector<256x64xf32>
    %21 = math.tanh %20 : vector<256x64xf32>
    %c0_15 = arith.constant 0 : index
    %c0_16 = arith.constant 0 : index
    %22 = vector.load %arg8[%c0_15, %c0_16] : memref<1x64xf32, #tpu.memory_space<vmem>>, vector<1x64xf32>
    %23 = vector.broadcast %22 : vector<1x64xf32> to vector<256x64xf32>
    %24 = arith.mulf %21, %23 : vector<256x64xf32>
    %cst_17 = arith.constant dense<0.000000e+00> : vector<256xf32>
    %25 = vector.multi_reduction <add>, %24, %cst_17 [1] : vector<256x64xf32> to vector<256xf32>
    %26 = vector.shape_cast %25 : vector<256xf32> to vector<256x1xf32>
    %c0_18 = arith.constant 0 : index
    %c0_19 = arith.constant 0 : index
    %27 = vector.load %arg9[%c0_18, %c0_19] : memref<1x1xf32, #tpu.memory_space<vmem>>, vector<1x1xf32>
    %28 = vector.broadcast %27 : vector<1x1xf32> to vector<256x1xf32>
    %29 = arith.addf %26, %28 : vector<256x1xf32>
    %c0_20 = arith.constant 0 : index
    %c0_21 = arith.constant 0 : index
    %30 = vector.load %arg10[%c0_20, %c0_21] : memref<256x1xf32, #tpu.memory_space<vmem>>, vector<256x1xf32>
    tpu.vector_store %arg10[%c0_20, %c0_21], %29 {strides = array<i32>} : memref<256x1xf32, #tpu.memory_space<vmem>>, vector<256x1xf32>,
    return
  }
  func.func @transform_0(%arg0: i32) -> (i32, i32) {
    %c0_i32 = arith.constant 0 : i32
    %c0_i32_0 = arith.constant 0 : i32
    return %arg0, %c0_i32 : i32, i32
  }
  func.func @transform_1(%arg0: i32) -> (i32, i32) {
    %c0_i32 = arith.constant 0 : i32
    %c0_i32_0 = arith.constant 0 : i32
    %c0_i32_1 = arith.constant 0 : i32
    return %c0_i32, %c0_i32_0 : i32, i32
  }
  func.func @transform_2(%arg0: i32) -> (i32, i32) {
    %c0_i32 = arith.constant 0 : i32
    %c0_i32_0 = arith.constant 0 : i32
    %c0_i32_1 = arith.constant 0 : i32
    return %c0_i32, %c0_i32_0 : i32, i32
  }
  func.func @transform_3(%arg0: i32) -> (i32, i32) {
    %c0_i32 = arith.constant 0 : i32
    %c0_i32_0 = arith.constant 0 : i32
    %c0_i32_1 = arith.constant 0 : i32
    return %c0_i32, %c0_i32_0 : i32, i32
  }
  func.func @transform_4(%arg0: i32) -> (i32, i32) {
    %c0_i32 = arith.constant 0 : i32
    %c0_i32_0 = arith.constant 0 : i32
    %c0_i32_1 = arith.constant 0 : i32
    return %c0_i32, %c0_i32_0 : i32, i32
  }
  func.func @transform_5(%arg0: i32) -> (i32, i32) {
    %c0_i32 = arith.constant 0 : i32
    %c0_i32_0 = arith.constant 0 : i32
    %c0_i32_1 = arith.constant 0 : i32
    return %c0_i32, %c0_i32_0 : i32, i32
  }
  func.func @transform_6(%arg0: i32) -> (i32, i32) {
    %c0_i32 = arith.constant 0 : i32
    %c0_i32_0 = arith.constant 0 : i32
    %c0_i32_1 = arith.constant 0 : i32
    return %c0_i32, %c0_i32_0 : i32, i32
  }
  func.func @transform_7(%arg0: i32) -> (i32, i32) {
    %c0_i32 = arith.constant 0 : i32
    %c0_i32_0 = arith.constant 0 : i32
    %c0_i32_1 = arith.constant 0 : i32
    return %c0_i32, %c0_i32_0 : i32, i32
  }
  func.func @transform_8(%arg0: i32) -> (i32, i32) {
    %c0_i32 = arith.constant 0 : i32
    %c0_i32_0 = arith.constant 0 : i32
    %c0_i32_1 = arith.constant 0 : i32
    return %c0_i32, %c0_i32_0 : i32, i32
  }
  func.func @transform_9(%arg0: i32) -> (i32, i32) {
    %c0_i32 = arith.constant 0 : i32
    %c0_i32_0 = arith.constant 0 : i32
    return %arg0, %c0_i32 : i32, i32
  }
}

</mosaic_0001>

<bundles_post_ra>
// kernel: tpu_custom_call.1
= control target key start
LH: loop header
LB: loop body
LE: loop exit
PB: predicated region body
PF: predicated region fallthrough
CT: control target
= control target key end

     0   :  { %s2507_s0 = inlined_call_operand.vmem [shape: f32[200,38], index: 0, kind: input, shape index: {}]   ;;  %s2508_s1 = inlined_call_operand.vmem [shape: bf16[38,64], index: 1, kind: input, shape index: {}]   ;;  %s2509_s2 = inlined_call_operand.vmem [shape: f32[1,64], index: 2, kind: input, shape index: {}]   ;;  %s2510_s3 = inlined_call_operand.vmem [shape: bf16[64,64], index: 3, kind: input, shape index: {}]   ;;  %s2511_s4 = inlined_call_operand.vmem [shape: f32[1,64], index: 4, kind: input, shape index: {}]   ;;  %s2512_s5 = inlined_call_operand.vmem [shape: bf16[64,64], index: 5, kind: input, shape index: {}]   ;;  %s2513_s6 = inlined_call_operand.vmem [shape: f32[1,64], index: 6, kind: input, shape index: {}]   ;;  %s2514_s7 = inlined_call_operand.vmem [shape: f32[1,64], index: 7, kind: input, shape index: {}]   ;;  %s2515_s8 = inlined_call_operand.<no memory space> [shape: f32[1,1], index: 8, kind: input, shape index: {}]   ;;  %s2516_s9 = inlined_call_operand.hbm [shape: f32[2,128], index: 9, kind: output, shape index: {}]  }
   0x1   :  { %v14_v0 = vstv %s2515_s8 }
   0x2   :  { %15 = vst [vmem:[#allocation2] sm:$0x1] %v14_v0 }
   0x3   :  { %v1713_v1 = vld [vmem:[%s2508_s1] sm:$0xff]   ;;  %v1714_v2 = vld [vmem:[%s2508_s1 + $0x8] sm:$0xff]   ;;  %vm111_vm0 = vcmask 310272   ;;  %v1715_v5 = vld [vmem:[%s2508_s1 + $0x10] ss:$0 sps:$4 sm:$0x77]  }
   0x4   :  { %1583 = vmatprep.subr.bf16.mxu0 %v1713_v1  ;;  %v36_v3 = vld [vmem:[%s2507_s0] sm:$0xff]  ;;  %1701 = vmatprep.subr.bf16.mxu1 %v1713_v1  ;;  %v37_v4 = vld [vmem:[%s2507_s0 + $0x8] sm:$0xff]  ;;  %vm160_vm1 = vcmask 1042432   ;;  %v38_v7 = vld [vmem:[%s2507_s0 + $0x10] sm:$0xff] }
   0x5   :  { %1584 = vmatpush3.bf16.msra.mxu0 %v1713_v1  ;;  %1704 = vmatpush3.bf16.msra.mxu1 %v1713_v1  ;;  %v68_v6 = vpack.c.bf16 %v37_v4, %v36_v3  ;;  %v39_v8 = vld [vmem:[%s2507_s0 + $0x18] sm:$0xff]  ;;  %v40_v9 = vld [vmem:[%s2507_s0 + $0x20] sm:$0xff]  ;;  %v41_v10 = vld [vmem:[%s2507_s0 + $0x28] sm:$0xff]  ;;  %v162_v11 = vsel %vm160_vm1, %v1715_v5, 0 }
   0x6   :  { %1585 = vmatprep.subr.bf16.mxu0 %v1714_v2  ;;  %1702 = vmatprep.subr.bf16.mxu1 %v1714_v2  ;;  %v52_v12 = vld [vmem:[%s2507_s0 + $0x80] sm:$0xff]  ;;  %v53_v13 = vld [vmem:[%s2507_s0 + $0x88] sm:$0xff]  ;;  %v54_v14 = vld [vmem:[%s2507_s0 + $0x90] sm:$0xff]  ;;  %v69_v19 = vpack.c.bf16 %v39_v8, %v38_v7  ;;  %v70_v21 = vpack.c.bf16 %v41_v10, %v40_v9 }
   0x7   :  { %1589 = vmatprep.mubr.msk.bf16.mxu0 %vm111_vm0, %v68_v6  ;;  %v76_v15 = vpack.c.bf16 %v53_v13, %v52_v12  ;;  %v55_v16 = vld [vmem:[%s2507_s0 + $0x98] sm:$0xff]  ;;  %v56_v17 = vld [vmem:[%s2507_s0 + $0xa0] sm:$0xff]  ;;  %v57_v18 = vld [vmem:[%s2507_s0 + $0xa8] sm:$0xff] }
   0x8   :  { %v77_v20 = vpack.c.bf16 %v55_v16, %v54_v14  ;;  %v78_v22 = vpack.c.bf16 %v57_v18, %v56_v17  ;;  %v42_v23 = vld [vmem:[%s2507_s0 + $0x30] sm:$0xff]  ;;  %v43_v24 = vld [vmem:[%s2507_s0 + $0x38] sm:$0xff]  ;;  %v44_v27 = vld [vmem:[%s2507_s0 + $0x40] sm:$0xff] }
   0x9   :  { %1586 = vmatpush3.bf16.msra.mxu0 %v1714_v2  ;;  %1705 = vmatpush3.bf16.msra.mxu1 %v1714_v2  ;;  %v58_v25 = vld [vmem:[%s2507_s0 + $0xb0] sm:$0xff]  ;;  %v59_v26 = vld [vmem:[%s2507_s0 + $0xb8] sm:$0xff]  ;;  %v45_v28 = vld [vmem:[%s2507_s0 + $0x48] sm:$0xff]  ;;  %v71_v33 = vpack.c.bf16 %v43_v24, %v42_v23 }
   0xa   :  { %1707 = vmatprep.subr.msk.bf16.mxu0 %vm160_vm1, %v1715_v5  ;;  %1708 = vmatprep.subr.msk.bf16.mxu1 %vm160_vm1, %v1715_v5  ;;  %v60_v29 = vld [vmem:[%s2507_s0 + $0xc0] sm:$0xff]  ;;  %v61_v30 = vld [vmem:[%s2507_s0 + $0xc8] sm:$0xff]  ;;  %v79_v34 = vpack.c.bf16 %v59_v26, %v58_v25  ;;  %v72_v35 = vpack.c.bf16 %v45_v28, %v44_v27 }
   0xb   :  { %1605 = vmatprep.mubr.msk.bf16.mxu1 %vm111_vm0, %v76_v15  ;;  %v1716_v31 = vld [vmem:[%s2510_s3] sm:$0xff]   ;;  %v1717_v32 = vld [vmem:[%s2510_s3 + $0x8] sm:$0xff]   ;;  %v80_v36 = vpack.c.bf16 %v61_v30, %v60_v29 }
   0xd   :  { %1588 = vmatpush3.bf16.msra.mxu0 %v162_v11  ;;  %1706 = vmatpush3.bf16.msra.mxu1 %v162_v11 }
   0xe   :  { %1621 = vmatprep.subr.bf16.mxu1 %v1716_v31 }
  0x10   :  { %1590 = vmatmul.mubr.msk.bf16.vlgmr.msra.gmra.mrb[0].mxu0 %vm111_vm0, %v69_v19  ;;  %1606 = vmatmul.mubr.msk.bf16.vlgmr.msra.gmra.mrb[0].mxu1 %vm111_vm0, %v77_v20 }
  0x11   :  { %1593 = vmatprep.mubr.msk.bf16.mxu0 %vm111_vm0, %v70_v21  ;;  %1609 = vmatprep.mubr.msk.bf16.mxu1 %vm111_vm0, %v78_v22 }
  0x12   :  { %1622 = vmatpush3.bf16.msra.mxu1 %v1716_v31 }
  0x13   :  { %1623 = vmatprep.subr.bf16.mxu1 %v1717_v32 }
  0x14   :  { %16 = vsyncpa [#allocation4], 0  ;;  %v46_v37 = vld [vmem:[%s2507_s0 + $0x50] sm:$0xff]  ;;  %v47_v38 = vld [vmem:[%s2507_s0 + $0x58] sm:$0xff]  ;;  %vm412_vm2 = vcmask 523264   ;;  %vm1263_vm3 = vcmask 130112  }
  0x15   :  { %v48_v39 = vld [vmem:[%s2507_s0 + $0x60] sm:$0xff]  ;;  %v62_v40 = vld [vmem:[%s2507_s0 + $0xd0] sm:$0xff]  ;;  %v63_v41 = vld [vmem:[%s2507_s0 + $0xd8] sm:$0xff]  ;;  %v73_v45 = vpack.c.bf16 %v47_v38, %v46_v37  ;;  %vm1270_vm4 = vcmask 195712   ;;  %vm1277_vm5 = vcmask 261312   ;;  %vm1284_vm6 = vcmask 326912  }
  0x16   :  { %1624 = vmatpush3.bf16.msra.mxu1 %v1717_v32  ;;  %v49_v42 = vld [vmem:[%s2507_s0 + $0x68] sm:$0xff]  ;;  %v64_v43 = vld [vmem:[%s2507_s0 + $0xe0] sm:$0xff]  ;;  %v81_v46 = vpack.c.bf16 %v63_v41, %v62_v40  ;;  %v50_v49 = vld [vmem:[%s2507_s0 + $0x70] sm:$0xff]  ;;  %vm1291_vm7 = vcmask 392512   ;;  %vm1298_vm8 = vcmask 458112   ;;  %vm1305_vm9 = vcmask 523712  }
  0x17   :  { %v65_v44 = vld [vmem:[%s2507_s0 + $0xe8] sm:$0xff]  ;;  %v74_v47 = vpack.c.bf16 %v49_v42, %v48_v39  ;;  %v51_v50 = vld [vmem:[%s2507_s0 + $0x78] sm:$0xff]  ;;  %v66_v51 = vld [vmem:[%s2507_s0 + $0xf0] sm:$0xff]  ;;  %vm1312_vm10 = vcmask 589312   ;;  %vm1319_vm11 = vcmask 654912   ;;  %vm1326_vm12 = vcmask 720512  }
  0x18   :  { %1594 = vmatmul.mubr.msk.bf16.gmra.mrb[4].mxu0 %vm111_vm0, %v71_v33  ;;  %1610 = vmatmul.mubr.msk.bf16.gmra.mrb[4].mxu1 %vm111_vm0, %v79_v34  ;;  %v82_v48 = vpack.c.bf16 %v65_v44, %v64_v43  ;;  %v67_v52 = vld [vmem:[%s2507_s0 + $0xf8] sm:$0xff]  ;;  %v75_v53 = vpack.c.bf16 %v51_v50, %v50_v49  ;;  %v1718_v55 = vld [vmem:[%s2510_s3 + $0x10] sm:$0xff]   ;;  %v1720_v57 = vld [vmem:[%s2512_s5] sm:$0xff]   ;;  %vm1333_vm13 = vcmask 786112   ;;  %vm1340_vm14 = vcmask 851712  }
  0x19   :  { %1597 = vmatprep.mubr.msk.bf16.mxu0 %vm111_vm0, %v72_v35  ;;  %1613 = vmatprep.mubr.msk.bf16.mxu1 %vm111_vm0, %v80_v36  ;;  %v83_v54 = vpack.c.bf16 %v67_v52, %v66_v51  ;;  %v1719_v56 = vld [vmem:[%s2510_s3 + $0x18] sm:$0xff]   ;;  %v1721_v58 = vld [vmem:[%s2512_s5 + $0x8] sm:$0xff]   ;;  %v2137_v59 = vld [vmem:[%s2509_s2] ss:$0 sm:$0xff]  ;;  %vm1347_vm15 = vcmask 917312   ;;  %vm1361_vm1 = vcmask 1048512  }
  0x1a   :  { %1625 = vmatprep.subr.bf16.mxu1 %v1718_v55  ;;  %1661 = vmatprep.subr.bf16.mxu0 %v1720_v57 }
  0x1b   :  { %1626 = vmatpush3.bf16.msra.mxu1 %v1718_v55  ;;  %1662 = vmatpush3.bf16.msra.mxu0 %v1720_v57 }
  0x1c   :  { %1627 = vmatprep.subr.bf16.mxu1 %v1719_v56  ;;  %1663 = vmatprep.subr.bf16.mxu0 %v1721_v58 }
  0x1f   :  { %1628 = vmatpush3.bf16.msra.mxu1 %v1719_v56  ;;  %1664 = vmatpush3.bf16.msra.mxu0 %v1721_v58 }
  0x20   :  { %1598 = vmatmul.mubr.msk.bf16.gmra.mrb[8].mxu0 %vm111_vm0, %v73_v45  ;;  %1614 = vmatmul.mubr.msk.bf16.gmra.mrb[8].mxu1 %vm111_vm0, %v81_v46 }
  0x21   :  { %1601 = vmatprep.mubr.msk.bf16.mxu0 %vm111_vm0, %v74_v47  ;;  %1617 = vmatprep.mubr.msk.bf16.mxu1 %vm111_vm0, %v82_v48 }
  0x28   :  { %1602 = vmatmul.mubr.msk.bf16.gmra.mrb[12].mxu0 %vm111_vm0, %v75_v53  ;;  %1618 = vmatmul.mubr.msk.bf16.gmra.mrb[12].mxu1 %vm111_vm0, %v83_v54  ;;  %vm1354_vm0 = vcmask 982912  }
  0xe3   :  { %v1591_v60 = vpop.f32.mrb[0].mxu0  ;;  %v1607_v61 = vpop.f32.mrb[0].mxu1 }
  0xe4   :  { %v207_v62 = vadd.f32 %v1591_v60, %v2137_v59  ;;  %v198_v63 = vpop.f32.mrb[1].mxu0  ;;  %v262_v0 = vpop.f32.mrb[1].mxu1  ;;  %v271_v6 = vadd.f32 %v1607_v61, %v2137_v59 }
  0xe5   :  { %v199_v1 = vadd.f32 %v2137_v59, %v198_v63  ;;  %v1592_v2 = vpop.f32.mrb[2].mxu0  ;;  %v1608_v3 = vpop.f32.mrb[2].mxu1  ;;  %v263_v9 = vadd.f32 %v2137_v59, %v262_v0 }
  0xe6   :  { %1724 = vtanh.f32 %v207_v62  ;;  %v210_v4 = vadd.f32 %v1592_v2, %v2137_v59  ;;  %v201_v5 = vpop.f32.mrb[3].mxu0  ;;  %v265_v7 = vpop.f32.mrb[3].mxu1  ;;  %v274_v10 = vadd.f32 %v1608_v3, %v2137_v59 }
  0xe7   :  { %1726 = vtanh.f32 %v199_v1  ;;  %v202_v8 = vadd.f32 %v2137_v59, %v201_v5  ;;  %v266_v11 = vadd.f32 %v2137_v59, %v265_v7 }
  0xe8   :  { %1728 = vtanh.f32 %v210_v4 }
  0xe9   :  { %1730 = vtanh.f32 %v202_v8 }
  0xea   :  { %1732 = vtanh.f32 %v271_v6 }
  0xeb   :  { %v1595_v12 = vpop.f32.mrb[4].mxu0  ;;  %1734 = vtanh.f32 %v263_v9  ;;  %v1611_v13 = vpop.f32.mrb[4].mxu1 }
  0xec   :  { %v223_v14 = vadd.f32 %v1595_v12, %v2137_v59  ;;  %v214_v15 = vpop.f32.mrb[5].mxu0  ;;  %1736 = vtanh.f32 %v274_v10  ;;  %v278_v16 = vpop.f32.mrb[5].mxu1  ;;  %v287_v22 = vadd.f32 %v1611_v13, %v2137_v59 }
  0xed   :  { %v215_v17 = vadd.f32 %v2137_v59, %v214_v15  ;;  %v1596_v18 = vpop.f32.mrb[6].mxu0  ;;  %1738 = vtanh.f32 %v266_v11  ;;  %v1612_v19 = vpop.f32.mrb[6].mxu1  ;;  %v279_v25 = vadd.f32 %v2137_v59, %v278_v16 }
  0xee   :  { %1740 = vtanh.f32 %v223_v14  ;;  %v226_v20 = vadd.f32 %v1596_v18, %v2137_v59  ;;  %v217_v21 = vpop.f32.mrb[7].mxu0  ;;  %v281_v23 = vpop.f32.mrb[7].mxu1  ;;  %v290_v27 = vadd.f32 %v1612_v19, %v2137_v59 }
  0xef   :  { %1742 = vtanh.f32 %v215_v17  ;;  %v218_v24 = vadd.f32 %v2137_v59, %v217_v21  ;;  %v282_v29 = vadd.f32 %v2137_v59, %v281_v23 }
  0xf0   :  { %v1725_v26 = vpop.eup %1724  ;;  %1744 = vtanh.f32 %v226_v20 }
  0xf1   :  { %v1727_v28 = vpop.eup %1726  ;;  %1746 = vtanh.f32 %v218_v24 }
  0xf2   :  { %v1729_v30 = vpop.eup %1728  ;;  %1748 = vtanh.f32 %v287_v22 }
  0xf3   :  { %v1731_v31 = vpop.eup %1730  ;;  %v358_v32 = vpack.c.bf16 %v1729_v30, %v1725_v26  ;;  %v1599_v33 = vpop.f32.mrb[8].mxu0  ;;  %1750 = vtanh.f32 %v279_v25 }
  0xf4   :  { %v1615_v34 = vpop.f32.mrb[8].mxu1  ;;  %v2155_v35 = vpop.eup %1732  ;;  %v239_v36 = vadd.f32 %v1599_v33, %v2137_v59  ;;  %v357_v38 = vpack.c.bf16 %v1731_v31, %v1727_v28  ;;  %1752 = vtanh.f32 %v290_v27 }
  0xf5   :  { %v230_v37 = vpop.f32.mrb[9].mxu0  ;;  %v294_v39 = vpop.f32.mrb[9].mxu1  ;;  %1754 = vtanh.f32 %v282_v29  ;;  %v303_v47 = vadd.f32 %v1615_v34, %v2137_v59 }
  0xf6   :  { %v2158_v40 = vpop.eup %1734  ;;  %v231_v41 = vadd.f32 %v2137_v59, %v230_v37  ;;  %v1600_v42 = vpop.f32.mrb[10].mxu0  ;;  %1756 = vtanh.f32 %v239_v36  ;;  %1629 = vmatprep.mubr.msk.bf16.mxu1 %vm412_vm2, %v357_v38  ;;  %v295_v51 = vadd.f32 %v2137_v59, %v294_v39 }
  0xf7   :  { %v1616_v43 = vpop.f32.mrb[10].mxu1  ;;  %v2161_v44 = vpop.eup %1736  ;;  %v242_v45 = vadd.f32 %v1600_v42, %v2137_v59  ;;  %1630 = vmatmul.mubr.msk.bf16.vlgmr.msra.gmra.mrb[16].mxu1 %vm412_vm2, %v358_v32 }
  0xf8   :  { %v233_v46 = vpop.f32.mrb[11].mxu0  ;;  %v297_v48 = vpop.f32.mrb[11].mxu1  ;;  %1758 = vtanh.f32 %v231_v41  ;;  %v366_v52 = vpack.c.bf16 %v2161_v44, %v2155_v35  ;;  %v306_v54 = vadd.f32 %v1616_v43, %v2137_v59  ;;  %v1723_v35 = vld [vmem:[%s2512_s5 + $0x18] sm:$0xff]   ;;  %v2217_v44 = vld [vmem:[%s2511_s4] ss:$0 sm:$0xff] }
  0xf9   :  { %v2166_v49 = vpop.eup %1738  ;;  %v234_v50 = vadd.f32 %v2137_v59, %v233_v46  ;;  %1760 = vtanh.f32 %v242_v45  ;;  %v298_v57 = vadd.f32 %v2137_v59, %v297_v48 }
  0xfa   :  { %v1741_v53 = vpop.eup %1740  ;;  %v365_v55 = vpack.c.bf16 %v2166_v49, %v2158_v40  ;;  %v1722_v40 = vld [vmem:[%s2512_s5 + $0x10] sm:$0xff]  }
  0xfb   :  { %v1743_v56 = vpop.eup %1742  ;;  %1762 = vtanh.f32 %v234_v50  ;;  %v1603_v61 = vpop.f32.mrb[12].mxu0  ;;  %1665 = vmatprep.subr.bf16.mxu0 %v1722_v40 }
  0xfc   :  { %v1745_v58 = vpop.eup %1744  ;;  %1764 = vtanh.f32 %v303_v47  ;;  %v1619_v63 = vpop.f32.mrb[12].mxu1  ;;  %v255_v1 = vadd.f32 %v1603_v61, %v2137_v59  ;;  %1666 = vmatpush3.bf16.msra.mxu0 %v1722_v40 }
  0xfd   :  { %v1747_v60 = vpop.eup %1746  ;;  %v360_v62 = vpack.c.bf16 %v1745_v58, %v1741_v53  ;;  %1766 = vtanh.f32 %v295_v51  ;;  %v246_v2 = vpop.f32.mrb[13].mxu0  ;;  %v319_v12 = vadd.f32 %v1619_v63, %v2137_v59  ;;  %1667 = vmatprep.subr.bf16.mxu0 %v1723_v35 }
  0xfe   :  { %v2177_v0 = vpop.eup %1748  ;;  %v359_v3 = vpack.c.bf16 %v1747_v60, %v1743_v56  ;;  %1768 = vtanh.f32 %v306_v54  ;;  %v310_v4 = vpop.f32.mrb[13].mxu1  ;;  %v247_v6 = vadd.f32 %v2137_v59, %v246_v2 }
  0xff   :  { %v1751_v5 = vpop.eup %1750  ;;  %v1604_v7 = vpop.f32.mrb[14].mxu0  ;;  %1770 = vtanh.f32 %v298_v57  ;;  %v311_v16 = vadd.f32 %v2137_v59, %v310_v4 }
 0x100   :  { %v1620_v8 = vpop.f32.mrb[14].mxu1  ;;  %v1753_v9 = vpop.eup %1752  ;;  %1772 = vtanh.f32 %v255_v1  ;;  %v258_v10 = vadd.f32 %v1604_v7, %v2137_v59  ;;  %1633 = vmatprep.mubr.msk.bf16.mxu1 %vm412_vm2, %v359_v3  ;;  %1668 = vmatpush3.bf16.msra.mxu0 %v1723_v35 }
 0x101   :  { %v249_v11 = vpop.f32.mrb[15].mxu0  ;;  %v313_v13 = vpop.f32.mrb[15].mxu1  ;;  %1774 = vtanh.f32 %v247_v6  ;;  %1634 = vmatmul.mubr.msk.bf16.gmra.mrb[20].mxu1 %vm412_vm2, %v360_v62  ;;  %v368_v17 = vpack.c.bf16 %v1753_v9, %v2177_v0  ;;  %v322_v20 = vadd.f32 %v1620_v8, %v2137_v59 }
 0x102   :  { %v1755_v14 = vpop.eup %1754  ;;  %v250_v15 = vadd.f32 %v2137_v59, %v249_v11  ;;  %1776 = vtanh.f32 %v258_v10  ;;  %v314_v22 = vadd.f32 %v2137_v59, %v313_v13 }
 0x103   :  { %v1757_v18 = vpop.eup %1756  ;;  %v367_v19 = vpack.c.bf16 %v1755_v14, %v1751_v5 }
 0x104   :  { %v1759_v21 = vpop.eup %1758  ;;  %1778 = vtanh.f32 %v250_v15 }
 0x105   :  { %v1761_v23 = vpop.eup %1760  ;;  %1780 = vtanh.f32 %v319_v12 }
 0x106   :  { %v1763_v24 = vpop.eup %1762  ;;  %v362_v25 = vpack.c.bf16 %v1761_v23, %v1757_v18  ;;  %1782 = vtanh.f32 %v311_v16 }
 0x107   :  { %v1765_v26 = vpop.eup %1764  ;;  %v361_v27 = vpack.c.bf16 %v1763_v24, %v1759_v21  ;;  %1784 = vtanh.f32 %v322_v20 }
 0x108   :  { %v1767_v28 = vpop.eup %1766  ;;  %1786 = vtanh.f32 %v314_v22 }
 0x109   :  { %v1769_v29 = vpop.eup %1768  ;;  %1637 = vmatprep.mubr.msk.bf16.mxu1 %vm412_vm2, %v361_v27 }
 0x10a   :  { %v1771_v30 = vpop.eup %1770  ;;  %1638 = vmatmul.mubr.msk.bf16.gmra.mrb[24].mxu1 %vm412_vm2, %v362_v25  ;;  %v370_v31 = vpack.c.bf16 %v1769_v29, %v1765_v26 }
 0x10b   :  { %v1773_v32 = vpop.eup %1772  ;;  %v369_v33 = vpack.c.bf16 %v1771_v30, %v1767_v28 }
 0x10c   :  { %v1775_v59 = vpop.eup %1774 }
 0x10d   :  { %v1777_v34 = vpop.eup %1776 }
 0x10e   :  { %v1779_v36 = vpop.eup %1778  ;;  %v364_v37 = vpack.c.bf16 %v1777_v34, %v1773_v32 }
 0x10f   :  { %v1781_v38 = vpop.eup %1780  ;;  %v363_v39 = vpack.c.bf16 %v1779_v36, %v1775_v59 }
 0x110   :  { %v1783_v41 = vpop.eup %1782 }
 0x111   :  { %v1785_v42 = vpop.eup %1784  ;;  %1641 = vmatprep.mubr.msk.bf16.mxu1 %vm412_vm2, %v363_v39 }
 0x112   :  { %v1787_v43 = vpop.eup %1786  ;;  %1642 = vmatmul.mubr.msk.bf16.gmra.mrb[28].mxu1 %vm412_vm2, %v364_v37  ;;  %v372_v45 = vpack.c.bf16 %v1785_v42, %v1781_v38 }
 0x113   :  { %1645 = vmatprep.mubr.msk.bf16.mxu1 %vm412_vm2, %v365_v55  ;;  %v371_v46 = vpack.c.bf16 %v1787_v43, %v1783_v41 }
 0x11a   :  { %1646 = vmatmul.mubr.msk.bf16.gmra.mrb[32].mxu1 %vm412_vm2, %v366_v52 }
 0x11b   :  { %1649 = vmatprep.mubr.msk.bf16.mxu1 %vm412_vm2, %v367_v19 }
 0x122   :  { %1650 = vmatmul.mubr.msk.bf16.gmra.mrb[36].mxu1 %vm412_vm2, %v368_v17 }
 0x123   :  { %1653 = vmatprep.mubr.msk.bf16.mxu1 %vm412_vm2, %v369_v33 }
 0x12a   :  { %1654 = vmatmul.mubr.msk.bf16.gmra.mrb[40].mxu1 %vm412_vm2, %v370_v31 }
 0x12b   :  { %1657 = vmatprep.mubr.msk.bf16.mxu1 %vm412_vm2, %v371_v46 }
 0x132   :  { %1658 = vmatmul.mubr.msk.bf16.gmra.mrb[44].mxu1 %vm412_vm2, %v372_v45 }
 0x1ca   :  { %v1631_v47 = vpop.f32.mrb[16].mxu1 }
 0x1cb   :  { %v504_v48 = vadd.f32 %v1631_v47, %v2217_v44  ;;  %v495_v49 = vpop.f32.mrb[17].mxu1 }
 0x1cc   :  { %v496_v50 = vadd.f32 %v2217_v44, %v495_v49  ;;  %v1632_v51 = vpop.f32.mrb[18].mxu1 }
 0x1cd   :  { %1788 = vtanh.f32 %v504_v48  ;;  %v507_v52 = vadd.f32 %v1632_v51, %v2217_v44  ;;  %v498_v53 = vpop.f32.mrb[19].mxu1 }
 0x1ce   :  { %1790 = vtanh.f32 %v496_v50  ;;  %v499_v54 = vadd.f32 %v2217_v44, %v498_v53 }
 0x1cf   :  { %1792 = vtanh.f32 %v507_v52 }
 0x1d0   :  { %1794 = vtanh.f32 %v499_v54 }
 0x1d4   :  { %v1635_v55 = vpop.f32.mrb[20].mxu1 }
 0x1d5   :  { %v520_v56 = vadd.f32 %v1635_v55, %v2217_v44  ;;  %v511_v57 = vpop.f32.mrb[21].mxu1 }
 0x1d6   :  { %v512_v58 = vadd.f32 %v2217_v44, %v511_v57  ;;  %v1636_v60 = vpop.f32.mrb[22].mxu1 }
 0x1d7   :  { %1796 = vtanh.f32 %v520_v56  ;;  %v523_v61 = vadd.f32 %v1636_v60, %v2217_v44  ;;  %v514_v62 = vpop.f32.mrb[23].mxu1  ;;  %v1789_v0 = vpop.eup %1788 }
 0x1d8   :  { %1798 = vtanh.f32 %v512_v58  ;;  %v515_v63 = vadd.f32 %v2217_v44, %v514_v62  ;;  %v1791_v1 = vpop.eup %1790 }
 0x1d9   :  { %1800 = vtanh.f32 %v523_v61  ;;  %v1793_v2 = vpop.eup %1792 }
 0x1da   :  { %1802 = vtanh.f32 %v515_v63  ;;  %v1795_v3 = vpop.eup %1794  ;;  %v655_v4 = vpack.c.bf16 %v1793_v2, %v1789_v0 }
 0x1db   :  { %v654_v8 = vpack.c.bf16 %v1795_v3, %v1791_v1 }
 0x1dd   :  { %v1639_v5 = vpop.f32.mrb[24].mxu1  ;;  %1669 = vmatprep.mubr.msk.bf16.mxu0 %vm412_vm2, %v654_v8 }
 0x1de   :  { %v536_v6 = vadd.f32 %v1639_v5, %v2217_v44  ;;  %v527_v7 = vpop.f32.mrb[25].mxu1  ;;  %1670 = vmatmul.mubr.msk.bf16.vlgmr.msra.gmra.mrb[16].mxu0 %vm412_vm2, %v655_v4 }
 0x1df   :  { %v528_v9 = vadd.f32 %v2217_v44, %v527_v7  ;;  %v1640_v10 = vpop.f32.mrb[26].mxu1 }
 0x1e0   :  { %1804 = vtanh.f32 %v536_v6  ;;  %v539_v11 = vadd.f32 %v1640_v10, %v2217_v44  ;;  %v530_v12 = vpop.f32.mrb[27].mxu1 }
 0x1e1   :  { %1806 = vtanh.f32 %v528_v9  ;;  %v531_v13 = vadd.f32 %v2217_v44, %v530_v12  ;;  %v1797_v14 = vpop.eup %1796 }
 0x1e2   :  { %1808 = vtanh.f32 %v539_v11  ;;  %v1799_v15 = vpop.eup %1798 }
 0x1e3   :  { %1810 = vtanh.f32 %v531_v13  ;;  %v1801_v16 = vpop.eup %1800 }
 0x1e4   :  { %v1803_v17 = vpop.eup %1802  ;;  %v657_v19 = vpack.c.bf16 %v1801_v16, %v1797_v14 }
 0x1e5   :  { %v1643_v18 = vpop.f32.mrb[28].mxu1  ;;  %v656_v22 = vpack.c.bf16 %v1803_v17, %v1799_v15 }
 0x1e6   :  { %v552_v20 = vadd.f32 %v1643_v18, %v2217_v44  ;;  %v543_v21 = vpop.f32.mrb[29].mxu1 }
 0x1e7   :  { %v544_v23 = vadd.f32 %v2217_v44, %v543_v21  ;;  %v1644_v24 = vpop.f32.mrb[30].mxu1  ;;  %1673 = vmatprep.mubr.msk.bf16.mxu0 %vm412_vm2, %v656_v22 }
 0x1e8   :  { %1812 = vtanh.f32 %v552_v20  ;;  %v555_v25 = vadd.f32 %v1644_v24, %v2217_v44  ;;  %v546_v26 = vpop.f32.mrb[31].mxu1  ;;  %1674 = vmatmul.mubr.msk.bf16.gmra.mrb[20].mxu0 %vm412_vm2, %v657_v19 }
 0x1e9   :  { %1814 = vtanh.f32 %v544_v23  ;;  %v547_v27 = vadd.f32 %v2217_v44, %v546_v26 }
 0x1ea   :  { %v1805_v28 = vpop.eup %1804  ;;  %1816 = vtanh.f32 %v555_v25 }
 0x1eb   :  { %v1807_v29 = vpop.eup %1806  ;;  %1818 = vtanh.f32 %v547_v27 }
 0x1ec   :  { %v1809_v30 = vpop.eup %1808 }
 0x1ed   :  { %v1811_v31 = vpop.eup %1810  ;;  %v1647_v32 = vpop.f32.mrb[32].mxu1  ;;  %v659_v33 = vpack.c.bf16 %v1809_v30, %v1805_v28 }
 0x1ee   :  { %v568_v59 = vadd.f32 %v1647_v32, %v2217_v44  ;;  %v559_v34 = vpop.f32.mrb[33].mxu1  ;;  %v658_v36 = vpack.c.bf16 %v1811_v31, %v1807_v29  ;;  %v2270_v32 = vld [vmem:[%s2513_s6] ss:$0 sm:$0xff] }
 0x1ef   :  { %v560_v37 = vadd.f32 %v2217_v44, %v559_v34  ;;  %v1648_v38 = vpop.f32.mrb[34].mxu1 }
 0x1f0   :  { %1820 = vtanh.f32 %v568_v59  ;;  %v571_v39 = vadd.f32 %v1648_v38, %v2217_v44  ;;  %v562_v41 = vpop.f32.mrb[35].mxu1  ;;  %1677 = vmatprep.mubr.msk.bf16.mxu0 %vm412_vm2, %v658_v36 }
 0x1f1   :  { %1822 = vtanh.f32 %v560_v37  ;;  %v563_v42 = vadd.f32 %v2217_v44, %v562_v41  ;;  %1678 = vmatmul.mubr.msk.bf16.gmra.mrb[24].mxu0 %vm412_vm2, %v659_v33 }
 0x1f2   :  { %v1813_v43 = vpop.eup %1812  ;;  %1824 = vtanh.f32 %v571_v39 }
 0x1f3   :  { %v1815_v45 = vpop.eup %1814  ;;  %1826 = vtanh.f32 %v563_v42 }
 0x1f4   :  { %v1817_v46 = vpop.eup %1816 }
 0x1f5   :  { %v1819_v40 = vpop.eup %1818  ;;  %v1651_v35 = vpop.f32.mrb[36].mxu1  ;;  %v661_v47 = vpack.c.bf16 %v1817_v46, %v1813_v43 }
 0x1f6   :  { %v584_v48 = vadd.f32 %v1651_v35, %v2217_v44  ;;  %v575_v49 = vpop.f32.mrb[37].mxu1  ;;  %v660_v50 = vpack.c.bf16 %v1819_v40, %v1815_v45 }
 0x1f7   :  { %v576_v51 = vadd.f32 %v2217_v44, %v575_v49  ;;  %v1652_v52 = vpop.f32.mrb[38].mxu1 }
 0x1f8   :  { %1828 = vtanh.f32 %v584_v48  ;;  %v587_v53 = vadd.f32 %v1652_v52, %v2217_v44  ;;  %v578_v54 = vpop.f32.mrb[39].mxu1  ;;  %1681 = vmatprep.mubr.msk.bf16.mxu0 %vm412_vm2, %v660_v50  ;;  %v2282_v48 = vld [vmem:[%s2514_s7] ss:$0 sm:$0xff]  ;;  %s1941_s7 = smov [#allocation3]  }
 0x1f9   :  { %1830 = vtanh.f32 %v576_v51  ;;  %v579_v55 = vadd.f32 %v2217_v44, %v578_v54  ;;  %1682 = vmatmul.mubr.msk.bf16.gmra.mrb[28].mxu0 %vm412_vm2, %v661_v47  ;;  %s1452_s28 = sshll.u32 %s1941_s7, 4  ;;  %s1453_s28 = int_to_ptr.vmem [resolvable:$true] %s1452_s28 }
 0x1fa   :  { %v1821_v56 = vpop.eup %1820  ;;  %1832 = vtanh.f32 %v587_v53  ;;  %s1916_s29 = scalar_lea.vmem %s1453_s28, 32  ;;  %p1921_p1 = scmp.lt.s32.totalorder %s1453_s28, %s1453_s28 }
 0x1fb   :  { %v1823_v57 = vpop.eup %1822  ;;  %1834 = vtanh.f32 %v579_v55  ;;  %p1917_p0 = scmp.ne.s32.totalorder %s1453_s28, %s1916_s29  ;;  %p1922_p2 = scmp.lt.s32.totalorder %s1916_s29, %s1916_s29 }
 0x1fc   :  { %v1825_v58 = vpop.eup %1824 }
 0x1fd   :  { %v1827_v60 = vpop.eup %1826  ;;  %v1655_v61 = vpop.f32.mrb[40].mxu1  ;;  %v663_v62 = vpack.c.bf16 %v1825_v58, %v1821_v56  ;;  %p1923_p3 = por %p1922_p2, %p1921_p1 }
 0x1fe   :  { %v600_v63 = vadd.f32 %v1655_v61, %v2217_v44  ;;  %v591_v0 = vpop.f32.mrb[41].mxu1  ;;  %v662_v1 = vpack.c.bf16 %v1827_v60, %v1823_v57 }
 0x1ff   :  { %v592_v2 = vadd.f32 %v2217_v44, %v591_v0  ;;  %v1656_v3 = vpop.f32.mrb[42].mxu1  ;;  %p1924_p4 = pnand %p1923_p3, %p1917_p0 }
 0x200   :  { %1836 = vtanh.f32 %v600_v63  ;;  %v603_v4 = vadd.f32 %v1656_v3, %v2217_v44  ;;  %v594_v5 = vpop.f32.mrb[43].mxu1  ;;  %1685 = vmatprep.mubr.msk.bf16.mxu0 %vm412_vm2, %v662_v1 }
 0x201   :  { %1838 = vtanh.f32 %v592_v2  ;;  %v595_v6 = vadd.f32 %v2217_v44, %v594_v5  ;;  %1686 = vmatmul.mubr.msk.bf16.gmra.mrb[32].mxu0 %vm412_vm2, %v663_v62 }
 0x202   :  { %v1829_v7 = vpop.eup %1828  ;;  %1840 = vtanh.f32 %v603_v4 }
 0x203   :  { %v1831_v8 = vpop.eup %1830  ;;  %1842 = vtanh.f32 %v595_v6 }
 0x204   :  { %v1833_v9 = vpop.eup %1832 }
 0x205   :  { %v1835_v10 = vpop.eup %1834  ;;  %v1659_v11 = vpop.f32.mrb[44].mxu1  ;;  %v665_v12 = vpack.c.bf16 %v1833_v9, %v1829_v7 }
 0x206   :  { %v616_v13 = vadd.f32 %v1659_v11, %v2217_v44  ;;  %v607_v14 = vpop.f32.mrb[45].mxu1  ;;  %v664_v15 = vpack.c.bf16 %v1835_v10, %v1831_v8 }
 0x207   :  { %v608_v16 = vadd.f32 %v2217_v44, %v607_v14  ;;  %v1660_v17 = vpop.f32.mrb[46].mxu1 }
 0x208   :  { %1844 = vtanh.f32 %v616_v13  ;;  %v619_v18 = vadd.f32 %v1660_v17, %v2217_v44  ;;  %v610_v19 = vpop.f32.mrb[47].mxu1  ;;  %1689 = vmatprep.mubr.msk.bf16.mxu0 %vm412_vm2, %v664_v15 }
 0x209   :  { %1846 = vtanh.f32 %v608_v16  ;;  %v611_v20 = vadd.f32 %v2217_v44, %v610_v19  ;;  %1690 = vmatmul.mubr.msk.bf16.gmra.mrb[36].mxu0 %vm412_vm2, %v665_v12 }
 0x20a   :  { %v1837_v21 = vpop.eup %1836  ;;  %1848 = vtanh.f32 %v619_v18 }
 0x20b   :  { %v1839_v22 = vpop.eup %1838  ;;  %1850 = vtanh.f32 %v611_v20 }
 0x20c   :  { %v1841_v23 = vpop.eup %1840 }
 0x20d   :  { %v1843_v24 = vpop.eup %1842  ;;  %v667_v25 = vpack.c.bf16 %v1841_v23, %v1837_v21 }
 0x20e   :  { %v666_v26 = vpack.c.bf16 %v1843_v24, %v1839_v22 }
 0x210   :  { %1693 = vmatprep.mubr.msk.bf16.mxu0 %vm412_vm2, %v666_v26 }
 0x211   :  { %1694 = vmatmul.mubr.msk.bf16.gmra.mrb[40].mxu0 %vm412_vm2, %v667_v25 }
 0x212   :  { %v1845_v27 = vpop.eup %1844 }
 0x213   :  { %v1847_v28 = vpop.eup %1846 }
 0x214   :  { %v1849_v29 = vpop.eup %1848 }
 0x215   :  { %v1851_v30 = vpop.eup %1850  ;;  %v669_v31 = vpack.c.bf16 %v1849_v29, %v1845_v27 }
 0x216   :  { %v668_v44 = vpack.c.bf16 %v1851_v30, %v1847_v28 }
 0x218   :  { %1697 = vmatprep.mubr.msk.bf16.mxu0 %vm412_vm2, %v668_v44 }
 0x219   :  { %1698 = vmatmul.mubr.msk.bf16.gmra.mrb[44].mxu0 %vm412_vm2, %v669_v31 }
 0x2b1   :  { %v1671_v33 = vpop.f32.mrb[16].mxu0 }
 0x2b2   :  { %v800_v59 = vadd.f32 %v1671_v33, %v2270_v32  ;;  %v791_v34 = vpop.f32.mrb[17].mxu0 }
 0x2b3   :  { %v792_v36 = vadd.f32 %v2270_v32, %v791_v34  ;;  %v1672_v37 = vpop.f32.mrb[18].mxu0  ;;  %v1940_v34 = vmov 0  }
 0x2b4   :  { %1852 = vtanh.f32 %v800_v59  ;;  %v803_v38 = vadd.f32 %v1672_v37, %v2270_v32  ;;  %v794_v39 = vpop.f32.mrb[19].mxu0  ;;  %1711 = vset.pattern.permute.xlu1 %v1940_v34  ;;  %1712 = vset.pattern.permute.xlu0 %v1940_v34 }
 0x2b5   :  { %1854 = vtanh.f32 %v792_v36  ;;  %v795_v41 = vadd.f32 %v2270_v32, %v794_v39 }
 0x2b6   :  { %1856 = vtanh.f32 %v803_v38 }
 0x2b7   :  { %1858 = vtanh.f32 %v795_v41 }
 0x2bb   :  { %v1675_v42 = vpop.f32.mrb[20].mxu0 }
 0x2bc   :  { %v816_v43 = vadd.f32 %v1675_v42, %v2270_v32  ;;  %v807_v45 = vpop.f32.mrb[21].mxu0 }
 0x2bd   :  { %v808_v46 = vadd.f32 %v2270_v32, %v807_v45  ;;  %v1676_v40 = vpop.f32.mrb[22].mxu0 }
 0x2be   :  { %1860 = vtanh.f32 %v816_v43  ;;  %v819_v35 = vadd.f32 %v1676_v40, %v2270_v32  ;;  %v810_v47 = vpop.f32.mrb[23].mxu0  ;;  %v1853_v50 = vpop.eup %1852 }
 0x2bf   :  { %1862 = vtanh.f32 %v808_v46  ;;  %v811_v49 = vadd.f32 %v2270_v32, %v810_v47  ;;  %v1855_v51 = vpop.eup %1854  ;;  %v959_v52 = vmul.f32 %v1853_v50, %v2282_v48 }
 0x2c0   :  { %1864 = vtanh.f32 %v819_v35  ;;  %v1857_v53 = vpop.eup %1856  ;;  %v957_v54 = vmul.f32 %v1855_v51, %v2282_v48 }
 0x2c1   :  { %1866 = vtanh.f32 %v811_v49  ;;  %v1859_v55 = vpop.eup %1858  ;;  %v995_v57 = vsel %vm412_vm2, %v959_v52, 0.0  ;;  %v960_v58 = vmul.f32 %v1857_v53, %v2282_v48 }
 0x2c2   :  { %996 = vadd.xlane.f32.xlu1 %v995_v57  ;;  %v989_v62 = vsel %vm412_vm2, %v957_v54, 0.0  ;;  %v958_v63 = vmul.f32 %v1859_v55, %v2282_v48 }
 0x2c3   :  { %990 = vadd.xlane.f32.xlu0 %v989_v62  ;;  %v998_v5 = vsel %vm412_vm2, %v960_v58, 0.0 }
 0x2c4   :  { %v1679_v56 = vpop.f32.mrb[24].mxu0  ;;  %v992_v7 = vsel %vm412_vm2, %v958_v63, 0.0 }
 0x2c5   :  { %v832_v60 = vadd.f32 %v1679_v56, %v2270_v32  ;;  %v823_v61 = vpop.f32.mrb[25].mxu0 }
 0x2c6   :  { %v824_v0 = vadd.f32 %v2270_v32, %v823_v61  ;;  %v1680_v1 = vpop.f32.mrb[26].mxu0  ;;  %999 = vadd.xlane.f32.xlu1 %v998_v5 }
 0x2c7   :  { %1868 = vtanh.f32 %v832_v60  ;;  %v835_v2 = vadd.f32 %v1680_v1, %v2270_v32  ;;  %v826_v3 = vpop.f32.mrb[27].mxu0  ;;  %993 = vadd.xlane.f32.xlu0 %v992_v7 }
 0x2c8   :  { %1870 = vtanh.f32 %v824_v0  ;;  %v827_v4 = vadd.f32 %v2270_v32, %v826_v3  ;;  %v1861_v6 = vpop.eup %1860 }
 0x2c9   :  { %1872 = vtanh.f32 %v835_v2  ;;  %v1863_v8 = vpop.eup %1862  ;;  %v963_v9 = vmul.f32 %v1861_v6, %v2282_v48 }
 0x2ca   :  { %1874 = vtanh.f32 %v827_v4  ;;  %v1865_v10 = vpop.eup %1864  ;;  %v961_v17 = vmul.f32 %v1863_v8, %v2282_v48 }
 0x2cb   :  { %v1867_v11 = vpop.eup %1866  ;;  %v1007_v13 = vsel %vm412_vm2, %v963_v9, 0.0  ;;  %v964_v14 = vmul.f32 %v1865_v10, %v2282_v48 }
 0x2cc   :  { %v1683_v12 = vpop.f32.mrb[28].mxu0  ;;  %1008 = vadd.xlane.f32.xlu0 %v1007_v13  ;;  %v962_v21 = vmul.f32 %v1867_v11, %v2282_v48  ;;  %v1001_v26 = vsel %vm412_vm2, %v961_v17, 0.0 }
 0x2cd   :  { %v848_v15 = vadd.f32 %v1683_v12, %v2270_v32  ;;  %v839_v16 = vpop.f32.mrb[29].mxu0  ;;  %v1010_v20 = vsel %vm412_vm2, %v964_v14, 0.0 }
 0x2ce   :  { %v840_v18 = vadd.f32 %v2270_v32, %v839_v16  ;;  %v1684_v19 = vpop.f32.mrb[30].mxu0  ;;  %1011 = vadd.xlane.f32.xlu1 %v1010_v20  ;;  %v1004_v28 = vsel %vm412_vm2, %v962_v21, 0.0 }
 0x2cf   :  { %1876 = vtanh.f32 %v848_v15  ;;  %v851_v22 = vadd.f32 %v1684_v19, %v2270_v32  ;;  %v842_v23 = vpop.f32.mrb[31].mxu0 }
 0x2d0   :  { %1878 = vtanh.f32 %v840_v18  ;;  %v843_v24 = vadd.f32 %v2270_v32, %v842_v23  ;;  %1002 = vadd.xlane.f32.xlu0 %v1001_v26 }
 0x2d1   :  { %v1869_v25 = vpop.eup %1868  ;;  %1880 = vtanh.f32 %v851_v22 }
 0x2d2   :  { %v1871_v27 = vpop.eup %1870  ;;  %1882 = vtanh.f32 %v843_v24  ;;  %v967_v29 = vmul.f32 %v1869_v25, %v2282_v48  ;;  %1005 = vadd.xlane.f32.xlu1 %v1004_v28 }
 0x2d3   :  { %v1873_v30 = vpop.eup %1872  ;;  %v965_v38 = vmul.f32 %v1871_v27, %v2282_v48 }
 0x2d4   :  { %v1875_v31 = vpop.eup %1874  ;;  %v1687_v44 = vpop.f32.mrb[32].mxu0  ;;  %v1019_v33 = vsel %vm412_vm2, %v967_v29, 0.0  ;;  %v968_v59 = vmul.f32 %v1873_v30, %v2282_v48 }
 0x2d5   :  { %v864_v36 = vadd.f32 %v1687_v44, %v2270_v32  ;;  %v855_v37 = vpop.f32.mrb[33].mxu0  ;;  %1020 = vadd.xlane.f32.xlu0 %v1019_v33  ;;  %v966_v43 = vmul.f32 %v1875_v31, %v2282_v48  ;;  %v1013_v47 = vsel %vm412_vm2, %v965_v38, 0.0 }
 0x2d6   :  { %v856_v39 = vadd.f32 %v2270_v32, %v855_v37  ;;  %v1688_v41 = vpop.f32.mrb[34].mxu0  ;;  %v1022_v42 = vsel %vm412_vm2, %v968_v59, 0.0 }
 0x2d7   :  { %1884 = vtanh.f32 %v864_v36  ;;  %v867_v45 = vadd.f32 %v1688_v41, %v2270_v32  ;;  %v858_v46 = vpop.f32.mrb[35].mxu0  ;;  %1023 = vadd.xlane.f32.xlu1 %v1022_v42  ;;  %v1016_v50 = vsel %vm412_vm2, %v966_v43, 0.0 }
 0x2d8   :  { %1886 = vtanh.f32 %v856_v39  ;;  %v859_v40 = vadd.f32 %v2270_v32, %v858_v46 }
 0x2d9   :  { %v1877_v35 = vpop.eup %1876  ;;  %1888 = vtanh.f32 %v867_v45  ;;  %1014 = vadd.xlane.f32.xlu0 %v1013_v47 }
 0x2da   :  { %v1879_v49 = vpop.eup %1878  ;;  %1890 = vtanh.f32 %v859_v40  ;;  %v971_v51 = vmul.f32 %v1877_v35, %v2282_v48 }
 0x2db   :  { %v1881_v52 = vpop.eup %1880  ;;  %1017 = vadd.xlane.f32.xlu1 %v1016_v50  ;;  %v969_v60 = vmul.f32 %v1879_v49, %v2282_v48 }
 0x2dc   :  { %v1883_v53 = vpop.eup %1882  ;;  %v1691_v54 = vpop.f32.mrb[36].mxu0  ;;  %v1031_v55 = vsel %vm412_vm2, %v971_v51, 0.0  ;;  %v972_v56 = vmul.f32 %v1881_v52, %v2282_v48 }
 0x2dd   :  { %v880_v57 = vadd.f32 %v1691_v54, %v2270_v32  ;;  %v871_v58 = vpop.f32.mrb[37].mxu0  ;;  %1032 = vadd.xlane.f32.xlu0 %v1031_v55  ;;  %v970_v0 = vmul.f32 %v1883_v53, %v2282_v48  ;;  %v1025_v5 = vsel %vm412_vm2, %v969_v60, 0.0 }
 0x2de   :  { %v872_v61 = vadd.f32 %v2270_v32, %v871_v58  ;;  %v1692_v62 = vpop.f32.mrb[38].mxu0  ;;  %v1034_v63 = vsel %vm412_vm2, %v972_v56, 0.0 }
 0x2df   :  { %1892 = vtanh.f32 %v880_v57  ;;  %v883_v1 = vadd.f32 %v1692_v62, %v2270_v32  ;;  %v874_v2 = vpop.f32.mrb[39].mxu0  ;;  %1035 = vadd.xlane.f32.xlu1 %v1034_v63  ;;  %v1028_v7 = vsel %vm412_vm2, %v970_v0, 0.0 }
 0x2e0   :  { %1894 = vtanh.f32 %v872_v61  ;;  %v875_v3 = vadd.f32 %v2270_v32, %v874_v2 }
 0x2e1   :  { %v1885_v4 = vpop.eup %1884  ;;  %1896 = vtanh.f32 %v883_v1  ;;  %1026 = vadd.xlane.f32.xlu0 %v1025_v5 }
 0x2e2   :  { %v1887_v6 = vpop.eup %1886  ;;  %1898 = vtanh.f32 %v875_v3  ;;  %v975_v8 = vmul.f32 %v1885_v4, %v2282_v48 }
 0x2e3   :  { %v1889_v9 = vpop.eup %1888  ;;  %1029 = vadd.xlane.f32.xlu1 %v1028_v7  ;;  %v973_v16 = vmul.f32 %v1887_v6, %v2282_v48  ;;  %v2373_v7 = vld [vmem:[#allocation2] ss:$0 sm:$0xff] }
 0x2e4   :  { %v1891_v10 = vpop.eup %1890  ;;  %v1695_v11 = vpop.f32.mrb[40].mxu0  ;;  %v1043_v12 = vsel %vm412_vm2, %v975_v8, 0.0  ;;  %v976_v13 = vmul.f32 %v1889_v9, %v2282_v48 }
 0x2e5   :  { %v896_v14 = vadd.f32 %v1695_v11, %v2270_v32  ;;  %v887_v15 = vpop.f32.mrb[41].mxu0  ;;  %1044 = vadd.xlane.f32.xlu0 %v1043_v12  ;;  %v974_v20 = vmul.f32 %v1891_v10, %v2282_v48  ;;  %v1037_v25 = vsel %vm412_vm2, %v973_v16, 0.0 }
 0x2e6   :  { %v888_v17 = vadd.f32 %v2270_v32, %v887_v15  ;;  %v1696_v18 = vpop.f32.mrb[42].mxu0  ;;  %v1046_v19 = vsel %vm412_vm2, %v976_v13, 0.0 }
 0x2e7   :  { %1900 = vtanh.f32 %v896_v14  ;;  %v899_v21 = vadd.f32 %v1696_v18, %v2270_v32  ;;  %v890_v22 = vpop.f32.mrb[43].mxu0  ;;  %1047 = vadd.xlane.f32.xlu1 %v1046_v19  ;;  %v1040_v27 = vsel %vm412_vm2, %v974_v20, 0.0 }
 0x2e8   :  { %1902 = vtanh.f32 %v888_v17  ;;  %v891_v23 = vadd.f32 %v2270_v32, %v890_v22 }
 0x2e9   :  { %v1893_v24 = vpop.eup %1892  ;;  %1904 = vtanh.f32 %v899_v21  ;;  %1038 = vadd.xlane.f32.xlu0 %v1037_v25 }
 0x2ea   :  { %v1895_v26 = vpop.eup %1894  ;;  %1906 = vtanh.f32 %v891_v23  ;;  %v979_v28 = vmul.f32 %v1893_v24, %v2282_v48 }
 0x2eb   :  { %v1897_v29 = vpop.eup %1896  ;;  %1041 = vadd.xlane.f32.xlu1 %v1040_v27  ;;  %v977_v36 = vmul.f32 %v1895_v26, %v2282_v48 }
 0x2ec   :  { %v1899_v30 = vpop.eup %1898  ;;  %v1699_v31 = vpop.f32.mrb[44].mxu0  ;;  %v1055_v44 = vsel %vm412_vm2, %v979_v28, 0.0  ;;  %v980_v33 = vmul.f32 %v1897_v29, %v2282_v48 }
 0x2ed   :  { %v912_v59 = vadd.f32 %v1699_v31, %v2270_v32  ;;  %v903_v34 = vpop.f32.mrb[45].mxu0  ;;  %1056 = vadd.xlane.f32.xlu0 %v1055_v44  ;;  %v978_v41 = vmul.f32 %v1899_v30, %v2282_v48  ;;  %v1049_v40 = vsel %vm412_vm2, %v977_v36, 0.0 }
 0x2ee   :  { %v904_v37 = vadd.f32 %v2270_v32, %v903_v34  ;;  %v1700_v38 = vpop.f32.mrb[46].mxu0  ;;  %v1058_v39 = vsel %vm412_vm2, %v980_v33, 0.0 }
 0x2ef   :  { %1908 = vtanh.f32 %v912_v59  ;;  %v915_v42 = vadd.f32 %v1700_v38, %v2270_v32  ;;  %v906_v43 = vpop.f32.mrb[47].mxu0  ;;  %1059 = vadd.xlane.f32.xlu1 %v1058_v39  ;;  %v1052_v47 = vsel %vm412_vm2, %v978_v41, 0.0 }
 0x2f0   :  { %1910 = vtanh.f32 %v904_v37  ;;  %v907_v45 = vadd.f32 %v2270_v32, %v906_v43 }
 0x2f1   :  { %v1901_v46 = vpop.eup %1900  ;;  %1912 = vtanh.f32 %v915_v42  ;;  %1050 = vadd.xlane.f32.xlu0 %v1049_v40 }
 0x2f2   :  { %v1903_v35 = vpop.eup %1902  ;;  %1914 = vtanh.f32 %v907_v45  ;;  %v983_v49 = vmul.f32 %v1901_v46, %v2282_v48 }
 0x2f3   :  { %v1905_v50 = vpop.eup %1904  ;;  %1053 = vadd.xlane.f32.xlu1 %v1052_v47  ;;  %v981_v32 = vmul.f32 %v1903_v35, %v2282_v48 }
 0x2f4   :  { %v1907_v51 = vpop.eup %1906  ;;  %v1067_v52 = vsel %vm412_vm2, %v983_v49, 0.0  ;;  %v984_v53 = vmul.f32 %v1905_v50, %v2282_v48 }
 0x2f5   :  { %1068 = vadd.xlane.f32.xlu0 %v1067_v52  ;;  %v982_v55 = vmul.f32 %v1907_v51, %v2282_v48  ;;  %v1061_v57 = vsel %vm412_vm2, %v981_v32, 0.0 }
 0x2f6   :  { %v1070_v54 = vsel %vm412_vm2, %v984_v53, 0.0 }
 0x2f7   :  { %1071 = vadd.xlane.f32.xlu1 %v1070_v54  ;;  %v1064_v60 = vsel %vm412_vm2, %v982_v55, 0.0 }
 0x2f9   :  { %v1909_v56 = vpop.eup %1908  ;;  %1062 = vadd.xlane.f32.xlu0 %v1061_v57 }
 0x2fa   :  { %v1911_v58 = vpop.eup %1910  ;;  %v987_v61 = vmul.f32 %v1909_v56, %v2282_v48 }
 0x2fb   :  { %v1913_v62 = vpop.eup %1912  ;;  %1065 = vadd.xlane.f32.xlu1 %v1064_v60  ;;  %v985_v2 = vmul.f32 %v1911_v58, %v2282_v48 }
 0x2fc   :  { %v1915_v63 = vpop.eup %1914  ;;  %v1079_v0 = vsel %vm412_vm2, %v987_v61, 0.0  ;;  %v988_v1 = vmul.f32 %v1913_v62, %v2282_v48 }
 0x2fd   :  { %1080 = vadd.xlane.f32.xlu0 %v1079_v0  ;;  %v986_v4 = vmul.f32 %v1915_v63, %v2282_v48  ;;  %v1073_v5 = vsel %vm412_vm2, %v985_v2, 0.0 }
 0x2fe   :  { %v1082_v3 = vsel %vm412_vm2, %v988_v1, 0.0 }
 0x2ff   :  { %1083 = vadd.xlane.f32.xlu1 %v1082_v3  ;;  %v1076_v6 = vsel %vm412_vm2, %v986_v4, 0.0  ;;  %vm1442_vm2 = vcmask 1041409  }
 0x301   :  { %1074 = vadd.xlane.f32.xlu0 %v1073_v5 }
 0x303   :  { %1077 = vadd.xlane.f32.xlu1 %v1076_v6 }
 0x34f   :  { %v997_v8 = vpop.xlane.xlu1 %996 }
 0x350   :  { %v1094_v9 = vadd.f32 %v2373_v7, %v997_v8  ;;  %v991_v10 = vpop.xlane.xlu0 %990 }
 0x351   :  { %v1092_v11 = vadd.f32 %v2373_v7, %v991_v10 }
 0x352   :  { %1163 = vperm.xlu1 %1711, %v1094_v9  }
 0x353   :  { %v1000_v12 = vpop.xlane.xlu1 %999  ;;  %1157 = vperm.xlu0 %1712, %v1092_v11  }
 0x354   :  { %v1095_v48 = vadd.f32 %v2373_v7, %v1000_v12  ;;  %v994_v13 = vpop.xlane.xlu0 %993 }
 0x355   :  { %v1093_v14 = vadd.f32 %v2373_v7, %v994_v13 }
 0x356   :  { %1166 = vperm.xlu1 %1711, %v1095_v48  }
 0x359   :  { %v1009_v15 = vpop.xlane.xlu0 %1008 }
 0x35a   :  { %1160 = vperm.xlu1 %1711, %v1093_v14   ;;  %v1098_v17 = vadd.f32 %v2373_v7, %v1009_v15 }
 0x35b   :  { %v1012_v16 = vpop.xlane.xlu1 %1011 }
 0x35c   :  { %v1099_v23 = vadd.f32 %v2373_v7, %v1012_v16 }
 0x35d   :  { %v1003_v18 = vpop.xlane.xlu0 %1002 }
 0x35e   :  { %1175 = vperm.xlu1 %1711, %v1098_v17   ;;  %v1096_v20 = vadd.f32 %v2373_v7, %v1003_v18  ;;  %v1252_v17 = vlaneseq }
 0x35f   :  { %v1006_v19 = vpop.xlane.xlu1 %1005 }
 0x360   :  { %v1097_v27 = vadd.f32 %v2373_v7, %v1006_v19 }
 0x362   :  { %v1021_v21 = vpop.xlane.xlu0 %1020  ;;  %1169 = vperm.xlu1 %1711, %v1096_v20  }
 0x363   :  { %v1102_v30 = vadd.f32 %v2373_v7, %v1021_v21 }
 0x364   :  { %v1024_v22 = vpop.xlane.xlu1 %1023 }
 0x365   :  { %v1103_v37 = vadd.f32 %v2373_v7, %v1024_v22 }
 0x366   :  { %v1015_v24 = vpop.xlane.xlu0 %1014  ;;  %1178 = vperm.xlu1 %1711, %v1099_v23   ;;  %v2422_v23 = vshrl.u32 %v1252_v17, 7 }
 0x367   :  { %v1100_v33 = vadd.f32 %v2373_v7, %v1015_v24 }
 0x368   :  { %v1018_v25 = vpop.xlane.xlu1 %1017 }
 0x369   :  { %v1101_v26 = vadd.f32 %v2373_v7, %v1018_v25 }
 0x36a   :  { %v1033_v28 = vpop.xlane.xlu0 %1032  ;;  %1172 = vperm.xlu1 %1711, %v1097_v27  }
 0x36b   :  { %1184 = vperm.xlu0 %1712, %v1101_v26   ;;  %v1106_v4 = vadd.f32 %v2373_v7, %v1033_v28 }
 0x36c   :  { %v1036_v29 = vpop.xlane.xlu1 %1035 }
 0x36d   :  { %v1107_v6 = vadd.f32 %v2373_v7, %v1036_v29 }
 0x36e   :  { %v1027_v31 = vpop.xlane.xlu0 %1026  ;;  %1187 = vperm.xlu1 %1711, %v1102_v30  }
 0x36f   :  { %v1104_v42 = vadd.f32 %v2373_v7, %v1027_v31 }
 0x370   :  { %v1030_v44 = vpop.xlane.xlu1 %1029 }
 0x371   :  { %v1105_v40 = vadd.f32 %v2373_v7, %v1030_v44 }
 0x372   :  { %v1045_v59 = vpop.xlane.xlu0 %1044  ;;  %1181 = vperm.xlu1 %1711, %v1100_v33  }
 0x373   :  { %v1110_v34 = vadd.f32 %v2373_v7, %v1045_v59 }
 0x374   :  { %v1048_v36 = vpop.xlane.xlu1 %1047 }
 0x375   :  { %1211 = vperm.xlu0 %1712, %v1110_v34   ;;  %v1111_v50 = vadd.f32 %v2373_v7, %v1048_v36 }
 0x376   :  { %v1039_v38 = vpop.xlane.xlu0 %1038  ;;  %1190 = vperm.xlu1 %1711, %v1103_v37  }
 0x377   :  { %v1108_v39 = vadd.f32 %v2373_v7, %v1039_v38 }
 0x378   :  { %v1042_v41 = vpop.xlane.xlu1 %1041 }
 0x379   :  { %1205 = vperm.xlu0 %1712, %v1108_v39   ;;  %v1109_v32 = vadd.f32 %v2373_v7, %v1042_v41 }
 0x37a   :  { %v1057_v43 = vpop.xlane.xlu0 %1056  ;;  %1193 = vperm.xlu1 %1711, %v1104_v42  }
 0x37b   :  { %v1114_v45 = vadd.f32 %v2373_v7, %v1057_v43 }
 0x37c   :  { %v1060_v46 = vpop.xlane.xlu1 %1059 }
 0x37d   :  { %1223 = vperm.xlu0 %1712, %v1114_v45   ;;  %v1115_v57 = vadd.f32 %v2373_v7, %v1060_v46 }
 0x37e   :  { %v1051_v35 = vpop.xlane.xlu0 %1050  ;;  %1196 = vperm.xlu1 %1711, %v1105_v40  }
 0x37f   :  { %v1112_v47 = vadd.f32 %v2373_v7, %v1051_v35 }
 0x380   :  { %v1054_v49 = vpop.xlane.xlu1 %1053 }
 0x381   :  { %1217 = vperm.xlu0 %1712, %v1112_v47   ;;  %v1113_v61 = vadd.f32 %v2373_v7, %v1054_v49 }
 0x382   :  { %v1069_v51 = vpop.xlane.xlu0 %1068  ;;  %1214 = vperm.xlu1 %1711, %v1111_v50  }
 0x383   :  { %v1118_v52 = vadd.f32 %v2373_v7, %v1069_v51 }
 0x384   :  { %v1072_v53 = vpop.xlane.xlu1 %1071 }
 0x385   :  { %1235 = vperm.xlu0 %1712, %v1118_v52   ;;  %v1119_v60 = vadd.f32 %v2373_v7, %v1072_v53 }
 0x386   :  { %v1063_v54 = vpop.xlane.xlu0 %1062  ;;  %1208 = vperm.xlu1 %1711, %v1109_v32  }
 0x387   :  { %v1116_v55 = vadd.f32 %v2373_v7, %v1063_v54 }
 0x388   :  { %v1066_v56 = vpop.xlane.xlu1 %1065 }
 0x389   :  { %1229 = vperm.xlu0 %1712, %v1116_v55   ;;  %v1117_v1 = vadd.f32 %v2373_v7, %v1066_v56 }
 0x38a   :  { %v1081_v58 = vpop.xlane.xlu0 %1080  ;;  %1226 = vperm.xlu1 %1711, %v1115_v57  }
 0x38b   :  { %v1122_v63 = vadd.f32 %v2373_v7, %v1081_v58 }
 0x38c   :  { %v1084_v62 = vpop.xlane.xlu1 %1083 }
 0x38d   :  { %1238 = vperm.xlu0 %1712, %v1119_v60   ;;  %v1123_v8 = vadd.f32 %v2373_v7, %v1084_v62 }
 0x38e   :  { %v1075_v0 = vpop.xlane.xlu0 %1074  ;;  %1220 = vperm.xlu1 %1711, %v1113_v61  }
 0x38f   :  { %v1120_v2 = vadd.f32 %v2373_v7, %v1075_v0 }
 0x390   :  { %v1078_v3 = vpop.xlane.xlu1 %1077 }
 0x391   :  { %1247 = vperm.xlu0 %1712, %v1122_v63   ;;  %v1121_v5 = vadd.f32 %v2373_v7, %v1078_v3  ;;  %v2417_v7 = vand.u32 127, %v1252_v17 }
 0x392   :  { %1232 = vperm.xlu1 %1711, %v1117_v1  }
 0x393   :  { %v1258_v21 = vadd.s32 4294967288, %v2417_v7  ;;  %v1265_v26 = vadd.s32 4294967280, %v2417_v7  ;;  %v1256_v28 = vsub.s32 %v2417_v7, %v2422_v23  ;;  %v1279_v30 = vadd.s32 4294967264, %v2417_v7 }
 0x394   :  { %v1272_v31 = vadd.s32 4294967272, %v2417_v7  ;;  %v1286_v33 = vadd.s32 4294967256, %v2417_v7  ;;  %v1293_v45 = vadd.s32 4294967248, %v2417_v7  ;;  %v1300_v49 = vadd.s32 4294967240, %v2417_v7 }
 0x395   :  { %1241 = vperm.xlu0 %1712, %v1120_v2   ;;  %v1261_v25 = vsub.s32 %v1258_v21, %v2422_v23  ;;  %v1268_v59 = vsub.s32 %v1265_v26, %v2422_v23  ;;  %v1282_v38 = vsub.s32 %v1279_v30, %v2422_v23  ;;  %v1307_v50 = vadd.s32 4294967232, %v2417_v7 }
 0x396   :  { %1199 = vperm.xlu1 %1711, %v1106_v4   ;;  %v1275_v39 = vsub.s32 %v1272_v31, %v2422_v23  ;;  %v1289_v42 = vsub.s32 %v1286_v33, %v2422_v23  ;;  %v1296_v53 = vsub.s32 %v1293_v45, %v2422_v23  ;;  %v1303_v60 = vsub.s32 %v1300_v49, %v2422_v23 }
 0x397   :  { %v1310_v61 = vsub.s32 %v1307_v50, %v2422_v23  ;;  %v1314_v63 = vadd.s32 4294967224, %v2417_v7  ;;  %v1321_v3 = vadd.s32 4294967216, %v2417_v7  ;;  %v1335_v17 = vadd.s32 4294967200, %v2417_v7 }
 0x399   :  { %1244 = vperm.xlu0 %1712, %v1121_v5  }
 0x39a   :  { %1202 = vperm.xlu1 %1711, %v1107_v6   ;;  %v1328_v6 = vadd.s32 4294967208, %v2417_v7 }
 0x39d   :  { %1250 = vperm.xlu0 %1712, %v1123_v8  }
 0x3d1   :  { %v1164_v9 = vpop.permute.xlu1 %1163 }
 0x3d2   :  { %v1158_v15 = vpop.permute.xlu0 %1157  ;;  %v1269_v43 = vrot.slane %v1164_v9, %v1268_v59 }
 0x3d3   :  { %v1257_v36 = vrot.slane %v1158_v15, %v1256_v28  ;;  %v1324_v15 = vsub.s32 %v1321_v3, %v2422_v23 }
 0x3d5   :  { %v1167_v10 = vpop.permute.xlu1 %1166 }
 0x3d6   :  { %v1276_v51 = vrot.slane %v1167_v10, %v1275_v39 }
 0x3d9   :  { %v1161_v11 = vpop.permute.xlu1 %1160 }
 0x3da   :  { %v1262_v44 = vrot.slane %v1161_v11, %v1261_v25 }
 0x3dc   :  { %v1264_v41 = vsel %vm1263_vm3, %v1262_v44, %v1257_v36  ;;  %v1349_v36 = vadd.s32 4294967184, %v2417_v7 }
 0x3dd   :  { %v2407_v12 = vpop.permute.xlu1 %1175  ;;  %v1271_v35 = vsel %vm1270_vm4, %v1269_v43, %v1264_v41 }
 0x3de   :  { %v1278_v54 = vsel %vm1277_vm5, %v1276_v51, %v1271_v35  ;;  %v1297_v2 = vrot.slane %v2407_v12, %v1296_v53 }
 0x3e1   :  { %v1170_v48 = vpop.permute.xlu1 %1169 }
 0x3e2   :  { %v1283_v47 = vrot.slane %v1170_v48, %v1282_v38 }
 0x3e4   :  { %v1285_v58 = vsel %vm1284_vm6, %v1283_v47, %v1278_v54 }
 0x3e5   :  { %v2409_v13 = vpop.permute.xlu1 %1178 }
 0x3e6   :  { %v1304_v48 = vrot.slane %v2409_v13, %v1303_v60 }
 0x3e9   :  { %v1173_v14 = vpop.permute.xlu1 %1172 }
 0x3ea   :  { %v2413_v18 = vpop.permute.xlu0 %1184  ;;  %v1290_v52 = vrot.slane %v1173_v14, %v1289_v42  ;;  %v1317_v14 = vsub.s32 %v1314_v63, %v2422_v23 }
 0x3ec   :  { %v1292_v0 = vsel %vm1291_vm7, %v1290_v52, %v1285_v58  ;;  %v1318_v44 = vrot.slane %v2413_v18, %v1317_v14  ;;  %v1356_v18 = vadd.s32 4294967176, %v2417_v7  ;;  %v1352_v52 = vsub.s32 %v1349_v36, %v2422_v23 }
 0x3ed   :  { %v2411_v16 = vpop.permute.xlu1 %1187  ;;  %v1299_v10 = vsel %vm1298_vm8, %v1297_v2, %v1292_v0 }
 0x3ee   :  { %v1325_v35 = vrot.slane %v2411_v16, %v1324_v15 }
 0x3f1   :  { %v2415_v19 = vpop.permute.xlu1 %1181 }
 0x3f2   :  { %v1311_v11 = vrot.slane %v2415_v19, %v1310_v61  ;;  %v1331_v19 = vsub.s32 %v1328_v6, %v2422_v23 }
 0x3f4   :  { %v1212_v20 = vpop.permute.xlu0 %1211 }
 0x3f5   :  { %v2420_v22 = vpop.permute.xlu1 %1190  ;;  %v1375_v62 = vrot.slane %v1212_v20, %v1268_v59  ;;  %v1342_v20 = vadd.s32 4294967192, %v2417_v7 }
 0x3f6   :  { %v1332_v50 = vrot.slane %v2420_v22, %v1331_v19  ;;  %v1359_v22 = vsub.s32 %v1356_v18, %v2422_v23 }
 0x3f8   :  { %v1206_v24 = vpop.permute.xlu0 %1205 }
 0x3f9   :  { %v2426_v27 = vpop.permute.xlu1 %1193  ;;  %v1366_v55 = vrot.slane %v1206_v24, %v1256_v28 }
 0x3fc   :  { %v2430_v29 = vpop.permute.xlu0 %1223 }
 0x3fd   :  { %v2436_v34 = vpop.permute.xlu1 %1196  ;;  %v1395_v30 = vrot.slane %v2430_v29, %v1296_v53 }
 0x400   :  { %v1218_v37 = vpop.permute.xlu0 %1217 }
 0x401   :  { %v1215_v46 = vpop.permute.xlu1 %1214  ;;  %v1385_v21 = vrot.slane %v1218_v37, %v1282_v38  ;;  %v1338_v37 = vsub.s32 %v1335_v17, %v2422_v23  ;;  %v1345_v38 = vsub.s32 %v1342_v20, %v2422_v23 }
 0x402   :  { %v1380_v8 = vrot.slane %v1215_v46, %v1275_v39 }
 0x403   :  { %v1339_v54 = vrot.slane %v2426_v27, %v1338_v37 }
 0x404   :  { %v2443_v40 = vpop.permute.xlu0 %1235 }
 0x405   :  { %v1209_v32 = vpop.permute.xlu1 %1208  ;;  %v1415_v47 = vrot.slane %v2443_v40, %v1324_v15  ;;  %v1346_v40 = vrot.slane %v2436_v34, %v1345_v38 }
 0x406   :  { %v1370_v56 = vrot.slane %v1209_v32, %v1261_v25  ;;  %v1306_v25 = vsel %vm1305_vm9, %v1304_v48, %v1299_v10 }
 0x407   :  { %v1313_v28 = vsel %vm1312_vm10, %v1311_v11, %v1306_v25 }
 0x408   :  { %v1230_v57 = vpop.permute.xlu0 %1229  ;;  %v1371_v1 = vsel %vm1263_vm3, %v1370_v56, %v1366_v55  ;;  %v1320_v43 = vsel %vm1319_vm11, %v1318_v44, %v1313_v28 }
 0x409   :  { %v1376_v4 = vsel %vm1270_vm4, %v1375_v62, %v1371_v1  ;;  %v1227_v5 = vpop.permute.xlu1 %1226  ;;  %v1405_v39 = vrot.slane %v1230_v57, %v1310_v61  ;;  %v1327_v32 = vsel %vm1326_vm12, %v1325_v35, %v1320_v43 }
 0x40a   :  { %v1381_v12 = vsel %vm1277_vm5, %v1380_v8, %v1376_v4  ;;  %v1400_v33 = vrot.slane %v1227_v5, %v1303_v60  ;;  %v1334_v62 = vsel %vm1333_vm13, %v1332_v50, %v1327_v32 }
 0x40b   :  { %v1386_v31 = vsel %vm1284_vm6, %v1385_v21, %v1381_v12  ;;  %v1341_v27 = vsel %vm1340_vm14, %v1339_v54, %v1334_v62 }
 0x40c   :  { %v1239_v9 = vpop.permute.xlu0 %1238  ;;  %v1348_v1 = vsel %vm1347_vm15, %v1346_v40, %v1341_v27 }
 0x40d   :  { %v1221_v24 = vpop.permute.xlu1 %1220  ;;  %v1420_v51 = vrot.slane %v1239_v9, %v1331_v19 }
 0x40e   :  { %v1390_v26 = vrot.slane %v1221_v24, %v1289_v42 }
 0x410   :  { %v1248_v13 = vpop.permute.xlu0 %1247  ;;  %v1391_v59 = vsel %vm1291_vm7, %v1390_v26, %v1386_v31 }
 0x411   :  { %v1396_v41 = vsel %vm1298_vm8, %v1395_v30, %v1391_v59  ;;  %v1233_v42 = vpop.permute.xlu1 %1232  ;;  %v1435_v2 = vrot.slane %v1248_v13, %v1352_v52 }
 0x412   :  { %v1401_v29 = vsel %vm1305_vm9, %v1400_v33, %v1396_v41  ;;  %v1410_v45 = vrot.slane %v1233_v42, %v1317_v14 }
 0x413   :  { %v1406_v49 = vsel %vm1312_vm10, %v1405_v39, %v1401_v29 }
 0x414   :  { %v1242_v46 = vpop.permute.xlu0 %1241  ;;  %v1411_v53 = vsel %vm1319_vm11, %v1410_v45, %v1406_v49 }
 0x415   :  { %v1416_v7 = vsel %vm1326_vm12, %v1415_v47, %v1411_v53  ;;  %v1425_v55 = vrot.slane %v1242_v46, %v1338_v37  ;;  %v1200_v16 = vpop.permute.xlu1 %1199 }
 0x416   :  { %v1421_v56 = vsel %vm1333_vm13, %v1420_v51, %v1416_v7  ;;  %v1353_v60 = vrot.slane %v1200_v16, %v1352_v52 }
 0x417   :  { %v1426_v58 = vsel %vm1340_vm14, %v1425_v55, %v1421_v56 }
 0x418   :  { %v1245_v57 = vpop.permute.xlu0 %1244  ;;  %v1355_v4 = vsel %vm1354_vm0, %v1353_v60, %v1348_v1 }
 0x419   :  { %v1430_v61 = vrot.slane %v1245_v57, %v1345_v38  ;;  %v1203_v0 = vpop.permute.xlu1 %1202 }
 0x41a   :  { %v1360_v3 = vrot.slane %v1203_v0, %v1359_v22 }
 0x41b   :  { %v1431_v63 = vsel %vm1347_vm15, %v1430_v61, %v1426_v58 }
 0x41c   :  { %v1251_v34 = vpop.permute.xlu0 %1250  ;;  %v1362_v23 = vsel %vm1361_vm1, %v1360_v3, %v1355_v4  ;;  %v1436_v6 = vsel %vm1354_vm0, %v1435_v2, %v1431_v63 }
 0x41d   :  { %v1440_v5 = vrot.slane %v1251_v34, %v1359_v22 }
 0x41f   :  { %v1441_v8 = vsel %vm1361_vm1, %v1440_v5, %v1436_v6 }
 0x420   :  { %v1443_v9 = vsel %vm1442_vm2, %v1441_v8, %v1362_v23 }
 0x421   :  { %1445 = vst [vmem:[#allocation3] sm:$0x3] %v1443_v9 }
 0x422   :  { %1927 = shalt.err (!%p1924_p4)
}
 0x423   :  { %s1928_s11 = scalar_lea.hbm %s2516_s9, 32 }
 0x424   :  { %p1929_p5 = scmp.ne.s32.totalorder %s2516_s9, %s1928_s11  ;;  %p1932_p6 = scmp.lt.u32.totalorder %s1928_s11, %s2516_s9 }
 0x426   :  { %p1934_p7 = pnand %p1932_p6, %p1929_p5 }
 0x428   :  { %1937 = shalt.err (!%p1934_p7)
}
 0x429   :  { %1455 = dma.vmem_to_hbm [thread:$0]  %s1453_s28, 32, %s2516_s9, [#allocation4]  }
 0x42a   :  { %1938 = dma.done.wait [#allocation4], 32  }
 0x42b   :  { %1939 = vsyncadd [#allocation4], 4294967264 }
 0x42c   :  { %1459 = vsyncpa [#allocation4], 1 }

// kernel: tpu_custom_call.1
= control target key start
LH: loop header
LB: loop body
LE: loop exit
PB: predicated region body
PF: predicated region fallthrough
CT: control target
= control target key end

     0   :  { %vm110_vm0 = vcmask 310272   ;;  %vm159_vm1 = vcmask 1042432   ;;  %vm411_vm2 = vcmask 523264   ;;  %vm1123_vm3 = vcmask 7168   ;;  %s2205_s1 = inlined_call_operand.vmem [shape: bf16[38,64], index: 1, kind: input, shape index: {}]   ;;  %s2206_s0 = inlined_call_operand.vmem [shape: f32[200,38], index: 0, kind: input, shape index: {}]   ;;  %s2207_s3 = inlined_call_operand.vmem [shape: bf16[64,64], index: 3, kind: input, shape index: {}]   ;;  %s2208_s5 = inlined_call_operand.vmem [shape: bf16[64,64], index: 5, kind: input, shape index: {}]   ;;  %s2209_s2 = inlined_call_operand.vmem [shape: f32[1,64], index: 2, kind: input, shape index: {}]   ;;  %s2210_s4 = inlined_call_operand.vmem [shape: f32[1,64], index: 4, kind: input, shape index: {}]   ;;  %s2211_s8 = inlined_call_operand.<no memory space> [shape: f32[1,1], index: 8, kind: input, shape index: {}]   ;;  %s2212_s6 = inlined_call_operand.vmem [shape: f32[1,64], index: 6, kind: input, shape index: {}]   ;;  %s2213_s7 = inlined_call_operand.vmem [shape: f32[1,64], index: 7, kind: input, shape index: {}]   ;;  %s2214_s9 = inlined_call_operand.vmem [shape: f32[256,1], index: 9, kind: output, shape index: {}]  }
   0x1   :  { %v1409_v0 = vld [vmem:[%s2205_s1] sm:$0xff]   ;;  %v1410_v1 = vld [vmem:[%s2205_s1 + $0x8] sm:$0xff]   ;;  %v1411_v4 = vld [vmem:[%s2205_s1 + $0x10] ss:$0 sps:$4 sm:$0x77]  }
   0x2   :  { %1283 = vmatprep.subr.bf16.mxu0 %v1409_v0  ;;  %v35_v2 = vld [vmem:[%s2206_s0] sm:$0xff]  ;;  %1401 = vmatprep.subr.bf16.mxu1 %v1409_v0  ;;  %v36_v3 = vld [vmem:[%s2206_s0 + $0x8] sm:$0xff]  ;;  %v37_v6 = vld [vmem:[%s2206_s0 + $0x10] sm:$0xff]  ;;  %v161_v10 = vsel %vm159_vm1, %v1411_v4, 0 }
   0x3   :  { %1284 = vmatpush3.bf16.msra.mxu0 %v1409_v0  ;;  %1404 = vmatpush3.bf16.msra.mxu1 %v1409_v0  ;;  %v67_v5 = vpack.c.bf16 %v36_v3, %v35_v2  ;;  %v38_v7 = vld [vmem:[%s2206_s0 + $0x18] sm:$0xff]  ;;  %v39_v8 = vld [vmem:[%s2206_s0 + $0x20] sm:$0xff]  ;;  %v40_v9 = vld [vmem:[%s2206_s0 + $0x28] sm:$0xff] }
   0x4   :  { %1285 = vmatprep.subr.bf16.mxu0 %v1410_v1  ;;  %1402 = vmatprep.subr.bf16.mxu1 %v1410_v1  ;;  %v51_v11 = vld [vmem:[%s2206_s0 + $0x80] sm:$0xff]  ;;  %v52_v12 = vld [vmem:[%s2206_s0 + $0x88] sm:$0xff]  ;;  %v53_v13 = vld [vmem:[%s2206_s0 + $0x90] sm:$0xff]  ;;  %v68_v18 = vpack.c.bf16 %v38_v7, %v37_v6  ;;  %v69_v20 = vpack.c.bf16 %v40_v9, %v39_v8 }
   0x5   :  { %1289 = vmatprep.mubr.msk.bf16.mxu0 %vm110_vm0, %v67_v5  ;;  %v75_v14 = vpack.c.bf16 %v52_v12, %v51_v11  ;;  %v54_v15 = vld [vmem:[%s2206_s0 + $0x98] sm:$0xff]  ;;  %v55_v16 = vld [vmem:[%s2206_s0 + $0xa0] sm:$0xff]  ;;  %v56_v17 = vld [vmem:[%s2206_s0 + $0xa8] sm:$0xff] }
   0x6   :  { %v76_v19 = vpack.c.bf16 %v54_v15, %v53_v13  ;;  %v77_v21 = vpack.c.bf16 %v56_v17, %v55_v16  ;;  %v41_v22 = vld [vmem:[%s2206_s0 + $0x30] sm:$0xff]  ;;  %v42_v23 = vld [vmem:[%s2206_s0 + $0x38] sm:$0xff]  ;;  %v43_v26 = vld [vmem:[%s2206_s0 + $0x40] sm:$0xff] }
   0x7   :  { %1286 = vmatpush3.bf16.msra.mxu0 %v1410_v1  ;;  %1405 = vmatpush3.bf16.msra.mxu1 %v1410_v1  ;;  %v57_v24 = vld [vmem:[%s2206_s0 + $0xb0] sm:$0xff]  ;;  %v58_v25 = vld [vmem:[%s2206_s0 + $0xb8] sm:$0xff]  ;;  %v44_v27 = vld [vmem:[%s2206_s0 + $0x48] sm:$0xff]  ;;  %v70_v32 = vpack.c.bf16 %v42_v23, %v41_v22 }
   0x8   :  { %1407 = vmatprep.subr.msk.bf16.mxu0 %vm159_vm1, %v1411_v4  ;;  %1408 = vmatprep.subr.msk.bf16.mxu1 %vm159_vm1, %v1411_v4  ;;  %v59_v28 = vld [vmem:[%s2206_s0 + $0xc0] sm:$0xff]  ;;  %v1413_v30 = vld [vmem:[%s2207_s3 + $0x8] sm:$0xff]   ;;  %v78_v33 = vpack.c.bf16 %v58_v25, %v57_v24  ;;  %v71_v34 = vpack.c.bf16 %v44_v27, %v43_v26  ;;  %v45_v36 = vld [vmem:[%s2206_s0 + $0x50] sm:$0xff] }
   0x9   :  { %1305 = vmatprep.mubr.msk.bf16.mxu1 %vm110_vm0, %v75_v14  ;;  %v1412_v29 = vld [vmem:[%s2207_s3] sm:$0xff]   ;;  %v60_v31 = vld [vmem:[%s2206_s0 + $0xc8] sm:$0xff]  ;;  %v46_v37 = vld [vmem:[%s2206_s0 + $0x58] sm:$0xff] }
   0xa   :  { %v79_v35 = vpack.c.bf16 %v60_v31, %v59_v28  ;;  %v47_v38 = vld [vmem:[%s2206_s0 + $0x60] sm:$0xff]  ;;  %v61_v39 = vld [vmem:[%s2206_s0 + $0xd0] sm:$0xff]  ;;  %v62_v40 = vld [vmem:[%s2206_s0 + $0xd8] sm:$0xff]  ;;  %v72_v44 = vpack.c.bf16 %v46_v37, %v45_v36 }
   0xb   :  { %1288 = vmatpush3.bf16.msra.mxu0 %v161_v10  ;;  %1406 = vmatpush3.bf16.msra.mxu1 %v161_v10  ;;  %v48_v41 = vld [vmem:[%s2206_s0 + $0x68] sm:$0xff]  ;;  %v63_v42 = vld [vmem:[%s2206_s0 + $0xe0] sm:$0xff]  ;;  %v80_v45 = vpack.c.bf16 %v62_v40, %v61_v39  ;;  %v49_v48 = vld [vmem:[%s2206_s0 + $0x70] sm:$0xff] }
   0xc   :  { %1321 = vmatprep.subr.bf16.mxu1 %v1412_v29  ;;  %v64_v43 = vld [vmem:[%s2206_s0 + $0xe8] sm:$0xff]  ;;  %v73_v46 = vpack.c.bf16 %v48_v41, %v47_v38  ;;  %v50_v49 = vld [vmem:[%s2206_s0 + $0x78] sm:$0xff]  ;;  %v65_v50 = vld [vmem:[%s2206_s0 + $0xf0] sm:$0xff] }
   0xd   :  { %v81_v47 = vpack.c.bf16 %v64_v43, %v63_v42  ;;  %v66_v51 = vld [vmem:[%s2206_s0 + $0xf8] sm:$0xff]  ;;  %v74_v52 = vpack.c.bf16 %v50_v49, %v49_v48  ;;  %v1414_v54 = vld [vmem:[%s2207_s3 + $0x10] sm:$0xff]   ;;  %v1416_v56 = vld [vmem:[%s2208_s5] sm:$0xff]  }
   0xe   :  { %1290 = vmatmul.mubr.msk.bf16.vlgmr.msra.gmra.mrb[0].mxu0 %vm110_vm0, %v68_v18  ;;  %1306 = vmatmul.mubr.msk.bf16.vlgmr.msra.gmra.mrb[0].mxu1 %vm110_vm0, %v76_v19  ;;  %v82_v53 = vpack.c.bf16 %v66_v51, %v65_v50  ;;  %v1415_v55 = vld [vmem:[%s2207_s3 + $0x18] sm:$0xff]   ;;  %v1417_v57 = vld [vmem:[%s2208_s5 + $0x8] sm:$0xff]   ;;  %v1804_v58 = vld [vmem:[%s2209_s2] ss:$0 sm:$0xff] }
   0xf   :  { %1293 = vmatprep.mubr.msk.bf16.mxu0 %vm110_vm0, %v69_v20  ;;  %1309 = vmatprep.mubr.msk.bf16.mxu1 %vm110_vm0, %v77_v21 }
  0x10   :  { %1322 = vmatpush3.bf16.msra.mxu1 %v1412_v29  ;;  %1361 = vmatprep.subr.bf16.mxu0 %v1416_v56 }
  0x11   :  { %1323 = vmatprep.subr.bf16.mxu1 %v1413_v30  ;;  %1362 = vmatpush3.bf16.msra.mxu0 %v1416_v56 }
  0x12   :  { %1363 = vmatprep.subr.bf16.mxu0 %v1417_v57 }
  0x14   :  { %1324 = vmatpush3.bf16.msra.mxu1 %v1413_v30 }
  0x15   :  { %1325 = vmatprep.subr.bf16.mxu1 %v1414_v54  ;;  %1364 = vmatpush3.bf16.msra.mxu0 %v1417_v57 }
  0x16   :  { %1294 = vmatmul.mubr.msk.bf16.gmra.mrb[4].mxu0 %vm110_vm0, %v70_v32  ;;  %1310 = vmatmul.mubr.msk.bf16.gmra.mrb[4].mxu1 %vm110_vm0, %v78_v33 }
  0x17   :  { %1297 = vmatprep.mubr.msk.bf16.mxu0 %vm110_vm0, %v71_v34  ;;  %1313 = vmatprep.mubr.msk.bf16.mxu1 %vm110_vm0, %v79_v35 }
  0x18   :  { %1326 = vmatpush3.bf16.msra.mxu1 %v1414_v54 }
  0x19   :  { %1327 = vmatprep.subr.bf16.mxu1 %v1415_v55 }
  0x1c   :  { %1328 = vmatpush3.bf16.msra.mxu1 %v1415_v55 }
  0x1e   :  { %1298 = vmatmul.mubr.msk.bf16.gmra.mrb[8].mxu0 %vm110_vm0, %v72_v44  ;;  %1314 = vmatmul.mubr.msk.bf16.gmra.mrb[8].mxu1 %vm110_vm0, %v80_v45 }
  0x1f   :  { %1301 = vmatprep.mubr.msk.bf16.mxu0 %vm110_vm0, %v73_v46  ;;  %1317 = vmatprep.mubr.msk.bf16.mxu1 %vm110_vm0, %v81_v47 }
  0x26   :  { %1302 = vmatmul.mubr.msk.bf16.gmra.mrb[12].mxu0 %vm110_vm0, %v74_v52  ;;  %1318 = vmatmul.mubr.msk.bf16.gmra.mrb[12].mxu1 %vm110_vm0, %v82_v53 }
  0xe1   :  { %v1291_v59 = vpop.f32.mrb[0].mxu0  ;;  %v1307_v60 = vpop.f32.mrb[0].mxu1 }
  0xe2   :  { %v206_v61 = vadd.f32 %v1291_v59, %v1804_v58  ;;  %v197_v62 = vpop.f32.mrb[1].mxu0  ;;  %v261_v63 = vpop.f32.mrb[1].mxu1  ;;  %v270_v5 = vadd.f32 %v1307_v60, %v1804_v58 }
  0xe3   :  { %v198_v0 = vadd.f32 %v1804_v58, %v197_v62  ;;  %v1292_v1 = vpop.f32.mrb[2].mxu0  ;;  %v1308_v2 = vpop.f32.mrb[2].mxu1  ;;  %v262_v8 = vadd.f32 %v1804_v58, %v261_v63 }
  0xe4   :  { %1420 = vtanh.f32 %v206_v61  ;;  %v209_v3 = vadd.f32 %v1292_v1, %v1804_v58  ;;  %v200_v4 = vpop.f32.mrb[3].mxu0  ;;  %v264_v6 = vpop.f32.mrb[3].mxu1  ;;  %v273_v9 = vadd.f32 %v1308_v2, %v1804_v58 }
  0xe5   :  { %1422 = vtanh.f32 %v198_v0  ;;  %v201_v7 = vadd.f32 %v1804_v58, %v200_v4  ;;  %v265_v10 = vadd.f32 %v1804_v58, %v264_v6 }
  0xe6   :  { %1424 = vtanh.f32 %v209_v3 }
  0xe7   :  { %1426 = vtanh.f32 %v201_v7 }
  0xe8   :  { %1428 = vtanh.f32 %v270_v5 }
  0xe9   :  { %v1295_v11 = vpop.f32.mrb[4].mxu0  ;;  %1430 = vtanh.f32 %v262_v8  ;;  %v1311_v12 = vpop.f32.mrb[4].mxu1 }
  0xea   :  { %v222_v13 = vadd.f32 %v1295_v11, %v1804_v58  ;;  %v213_v14 = vpop.f32.mrb[5].mxu0  ;;  %1432 = vtanh.f32 %v273_v9  ;;  %v277_v15 = vpop.f32.mrb[5].mxu1  ;;  %v286_v21 = vadd.f32 %v1311_v12, %v1804_v58 }
  0xeb   :  { %v214_v16 = vadd.f32 %v1804_v58, %v213_v14  ;;  %v1296_v17 = vpop.f32.mrb[6].mxu0  ;;  %1434 = vtanh.f32 %v265_v10  ;;  %v1312_v18 = vpop.f32.mrb[6].mxu1  ;;  %v278_v24 = vadd.f32 %v1804_v58, %v277_v15 }
  0xec   :  { %1436 = vtanh.f32 %v222_v13  ;;  %v225_v19 = vadd.f32 %v1296_v17, %v1804_v58  ;;  %v216_v20 = vpop.f32.mrb[7].mxu0  ;;  %v280_v22 = vpop.f32.mrb[7].mxu1  ;;  %v289_v26 = vadd.f32 %v1312_v18, %v1804_v58 }
  0xed   :  { %1438 = vtanh.f32 %v214_v16  ;;  %v217_v23 = vadd.f32 %v1804_v58, %v216_v20  ;;  %v281_v28 = vadd.f32 %v1804_v58, %v280_v22 }
  0xee   :  { %v1421_v25 = vpop.eup %1420  ;;  %1440 = vtanh.f32 %v225_v19 }
  0xef   :  { %v1423_v27 = vpop.eup %1422  ;;  %1442 = vtanh.f32 %v217_v23 }
  0xf0   :  { %v1425_v29 = vpop.eup %1424  ;;  %1444 = vtanh.f32 %v286_v21 }
  0xf1   :  { %v1427_v30 = vpop.eup %1426  ;;  %v357_v31 = vpack.c.bf16 %v1425_v29, %v1421_v25  ;;  %v1299_v32 = vpop.f32.mrb[8].mxu0  ;;  %1446 = vtanh.f32 %v278_v24 }
  0xf2   :  { %v1315_v33 = vpop.f32.mrb[8].mxu1  ;;  %v1822_v34 = vpop.eup %1428  ;;  %v238_v35 = vadd.f32 %v1299_v32, %v1804_v58  ;;  %v356_v37 = vpack.c.bf16 %v1427_v30, %v1423_v27  ;;  %1448 = vtanh.f32 %v289_v26 }
  0xf3   :  { %v229_v36 = vpop.f32.mrb[9].mxu0  ;;  %v293_v38 = vpop.f32.mrb[9].mxu1  ;;  %1450 = vtanh.f32 %v281_v28  ;;  %v302_v46 = vadd.f32 %v1315_v33, %v1804_v58 }
  0xf4   :  { %v1825_v39 = vpop.eup %1430  ;;  %v230_v40 = vadd.f32 %v1804_v58, %v229_v36  ;;  %v1300_v41 = vpop.f32.mrb[10].mxu0  ;;  %1452 = vtanh.f32 %v238_v35  ;;  %1329 = vmatprep.mubr.msk.bf16.mxu1 %vm411_vm2, %v356_v37  ;;  %v294_v50 = vadd.f32 %v1804_v58, %v293_v38 }
  0xf5   :  { %v1316_v42 = vpop.f32.mrb[10].mxu1  ;;  %v1828_v43 = vpop.eup %1432  ;;  %v241_v44 = vadd.f32 %v1300_v41, %v1804_v58  ;;  %1330 = vmatmul.mubr.msk.bf16.vlgmr.msra.gmra.mrb[16].mxu1 %vm411_vm2, %v357_v31 }
  0xf6   :  { %v232_v45 = vpop.f32.mrb[11].mxu0  ;;  %v296_v47 = vpop.f32.mrb[11].mxu1  ;;  %1454 = vtanh.f32 %v230_v40  ;;  %v365_v51 = vpack.c.bf16 %v1828_v43, %v1822_v34  ;;  %v305_v53 = vadd.f32 %v1316_v42, %v1804_v58  ;;  %v1419_v34 = vld [vmem:[%s2208_s5 + $0x18] sm:$0xff]   ;;  %v1884_v43 = vld [vmem:[%s2210_s4] ss:$0 sm:$0xff] }
  0xf7   :  { %v1833_v48 = vpop.eup %1434  ;;  %v233_v49 = vadd.f32 %v1804_v58, %v232_v45  ;;  %1456 = vtanh.f32 %v241_v44  ;;  %v297_v56 = vadd.f32 %v1804_v58, %v296_v47 }
  0xf8   :  { %v1437_v52 = vpop.eup %1436  ;;  %v364_v54 = vpack.c.bf16 %v1833_v48, %v1825_v39  ;;  %v1418_v39 = vld [vmem:[%s2208_s5 + $0x10] sm:$0xff]  }
  0xf9   :  { %v1439_v55 = vpop.eup %1438  ;;  %1458 = vtanh.f32 %v233_v49  ;;  %v1303_v60 = vpop.f32.mrb[12].mxu0  ;;  %1365 = vmatprep.subr.bf16.mxu0 %v1418_v39 }
  0xfa   :  { %v1441_v57 = vpop.eup %1440  ;;  %1460 = vtanh.f32 %v302_v46  ;;  %v1319_v62 = vpop.f32.mrb[12].mxu1  ;;  %v254_v0 = vadd.f32 %v1303_v60, %v1804_v58  ;;  %1366 = vmatpush3.bf16.msra.mxu0 %v1418_v39 }
  0xfb   :  { %v1443_v59 = vpop.eup %1442  ;;  %v359_v61 = vpack.c.bf16 %v1441_v57, %v1437_v52  ;;  %1462 = vtanh.f32 %v294_v50  ;;  %v245_v1 = vpop.f32.mrb[13].mxu0  ;;  %v318_v11 = vadd.f32 %v1319_v62, %v1804_v58  ;;  %1367 = vmatprep.subr.bf16.mxu0 %v1419_v34 }
  0xfc   :  { %v1844_v63 = vpop.eup %1444  ;;  %v358_v2 = vpack.c.bf16 %v1443_v59, %v1439_v55  ;;  %1464 = vtanh.f32 %v305_v53  ;;  %v309_v3 = vpop.f32.mrb[13].mxu1  ;;  %v246_v5 = vadd.f32 %v1804_v58, %v245_v1 }
  0xfd   :  { %v1447_v4 = vpop.eup %1446  ;;  %v1304_v6 = vpop.f32.mrb[14].mxu0  ;;  %1466 = vtanh.f32 %v297_v56  ;;  %v310_v15 = vadd.f32 %v1804_v58, %v309_v3 }
  0xfe   :  { %v1320_v7 = vpop.f32.mrb[14].mxu1  ;;  %v1449_v8 = vpop.eup %1448  ;;  %1468 = vtanh.f32 %v254_v0  ;;  %v257_v9 = vadd.f32 %v1304_v6, %v1804_v58  ;;  %1333 = vmatprep.mubr.msk.bf16.mxu1 %vm411_vm2, %v358_v2  ;;  %1368 = vmatpush3.bf16.msra.mxu0 %v1419_v34 }
  0xff   :  { %v248_v10 = vpop.f32.mrb[15].mxu0  ;;  %v312_v12 = vpop.f32.mrb[15].mxu1  ;;  %1470 = vtanh.f32 %v246_v5  ;;  %1334 = vmatmul.mubr.msk.bf16.gmra.mrb[20].mxu1 %vm411_vm2, %v359_v61  ;;  %v367_v16 = vpack.c.bf16 %v1449_v8, %v1844_v63  ;;  %v321_v18 = vadd.f32 %v1320_v7, %v1804_v58 }
 0x100   :  { %v1451_v13 = vpop.eup %1450  ;;  %v249_v14 = vadd.f32 %v1804_v58, %v248_v10  ;;  %1472 = vtanh.f32 %v257_v9  ;;  %v313_v21 = vadd.f32 %v1804_v58, %v312_v12 }
 0x101   :  { %v1453_v17 = vpop.eup %1452  ;;  %v366_v19 = vpack.c.bf16 %v1451_v13, %v1447_v4 }
 0x102   :  { %v1455_v20 = vpop.eup %1454  ;;  %1474 = vtanh.f32 %v249_v14 }
 0x103   :  { %v1457_v22 = vpop.eup %1456  ;;  %1476 = vtanh.f32 %v318_v11 }
 0x104   :  { %v1459_v23 = vpop.eup %1458  ;;  %v361_v24 = vpack.c.bf16 %v1457_v22, %v1453_v17  ;;  %1478 = vtanh.f32 %v310_v15 }
 0x105   :  { %v1461_v25 = vpop.eup %1460  ;;  %v360_v26 = vpack.c.bf16 %v1459_v23, %v1455_v20  ;;  %1480 = vtanh.f32 %v321_v18 }
 0x106   :  { %v1463_v27 = vpop.eup %1462  ;;  %1482 = vtanh.f32 %v313_v21 }
 0x107   :  { %v1465_v28 = vpop.eup %1464  ;;  %1337 = vmatprep.mubr.msk.bf16.mxu1 %vm411_vm2, %v360_v26 }
 0x108   :  { %v1467_v29 = vpop.eup %1466  ;;  %1338 = vmatmul.mubr.msk.bf16.gmra.mrb[24].mxu1 %vm411_vm2, %v361_v24  ;;  %v369_v30 = vpack.c.bf16 %v1465_v28, %v1461_v25 }
 0x109   :  { %v1469_v31 = vpop.eup %1468  ;;  %v368_v32 = vpack.c.bf16 %v1467_v29, %v1463_v27 }
 0x10a   :  { %v1471_v58 = vpop.eup %1470 }
 0x10b   :  { %v1473_v33 = vpop.eup %1472 }
 0x10c   :  { %v1475_v35 = vpop.eup %1474  ;;  %v363_v36 = vpack.c.bf16 %v1473_v33, %v1469_v31 }
 0x10d   :  { %v1477_v37 = vpop.eup %1476  ;;  %v362_v38 = vpack.c.bf16 %v1475_v35, %v1471_v58 }
 0x10e   :  { %v1479_v40 = vpop.eup %1478 }
 0x10f   :  { %v1481_v41 = vpop.eup %1480  ;;  %1341 = vmatprep.mubr.msk.bf16.mxu1 %vm411_vm2, %v362_v38 }
 0x110   :  { %v1483_v42 = vpop.eup %1482  ;;  %1342 = vmatmul.mubr.msk.bf16.gmra.mrb[28].mxu1 %vm411_vm2, %v363_v36  ;;  %v371_v44 = vpack.c.bf16 %v1481_v41, %v1477_v37 }
 0x111   :  { %1345 = vmatprep.mubr.msk.bf16.mxu1 %vm411_vm2, %v364_v54  ;;  %v370_v45 = vpack.c.bf16 %v1483_v42, %v1479_v40 }
 0x118   :  { %1346 = vmatmul.mubr.msk.bf16.gmra.mrb[32].mxu1 %vm411_vm2, %v365_v51 }
 0x119   :  { %1349 = vmatprep.mubr.msk.bf16.mxu1 %vm411_vm2, %v366_v19 }
 0x120   :  { %1350 = vmatmul.mubr.msk.bf16.gmra.mrb[36].mxu1 %vm411_vm2, %v367_v16 }
 0x121   :  { %1353 = vmatprep.mubr.msk.bf16.mxu1 %vm411_vm2, %v368_v32 }
 0x128   :  { %1354 = vmatmul.mubr.msk.bf16.gmra.mrb[40].mxu1 %vm411_vm2, %v369_v30 }
 0x129   :  { %1357 = vmatprep.mubr.msk.bf16.mxu1 %vm411_vm2, %v370_v45 }
 0x130   :  { %1358 = vmatmul.mubr.msk.bf16.gmra.mrb[44].mxu1 %vm411_vm2, %v371_v44 }
 0x1c8   :  { %v1331_v46 = vpop.f32.mrb[16].mxu1 }
 0x1c9   :  { %v503_v47 = vadd.f32 %v1331_v46, %v1884_v43  ;;  %v494_v48 = vpop.f32.mrb[17].mxu1 }
 0x1ca   :  { %v495_v49 = vadd.f32 %v1884_v43, %v494_v48  ;;  %v1332_v50 = vpop.f32.mrb[18].mxu1 }
 0x1cb   :  { %1484 = vtanh.f32 %v503_v47  ;;  %v506_v51 = vadd.f32 %v1332_v50, %v1884_v43  ;;  %v497_v52 = vpop.f32.mrb[19].mxu1 }
 0x1cc   :  { %1486 = vtanh.f32 %v495_v49  ;;  %v498_v53 = vadd.f32 %v1884_v43, %v497_v52 }
 0x1cd   :  { %1488 = vtanh.f32 %v506_v51 }
 0x1ce   :  { %1490 = vtanh.f32 %v498_v53 }
 0x1d2   :  { %v1335_v54 = vpop.f32.mrb[20].mxu1 }
 0x1d3   :  { %v519_v55 = vadd.f32 %v1335_v54, %v1884_v43  ;;  %v510_v56 = vpop.f32.mrb[21].mxu1 }
 0x1d4   :  { %v511_v57 = vadd.f32 %v1884_v43, %v510_v56  ;;  %v1336_v59 = vpop.f32.mrb[22].mxu1 }
 0x1d5   :  { %1492 = vtanh.f32 %v519_v55  ;;  %v522_v60 = vadd.f32 %v1336_v59, %v1884_v43  ;;  %v513_v61 = vpop.f32.mrb[23].mxu1  ;;  %v1485_v63 = vpop.eup %1484 }
 0x1d6   :  { %1494 = vtanh.f32 %v511_v57  ;;  %v514_v62 = vadd.f32 %v1884_v43, %v513_v61  ;;  %v1487_v0 = vpop.eup %1486 }
 0x1d7   :  { %1496 = vtanh.f32 %v522_v60  ;;  %v1489_v1 = vpop.eup %1488 }
 0x1d8   :  { %1498 = vtanh.f32 %v514_v62  ;;  %v1491_v2 = vpop.eup %1490  ;;  %v654_v3 = vpack.c.bf16 %v1489_v1, %v1485_v63 }
 0x1d9   :  { %v653_v7 = vpack.c.bf16 %v1491_v2, %v1487_v0 }
 0x1db   :  { %v1339_v4 = vpop.f32.mrb[24].mxu1  ;;  %1369 = vmatprep.mubr.msk.bf16.mxu0 %vm411_vm2, %v653_v7 }
 0x1dc   :  { %v535_v5 = vadd.f32 %v1339_v4, %v1884_v43  ;;  %v526_v6 = vpop.f32.mrb[25].mxu1  ;;  %1370 = vmatmul.mubr.msk.bf16.vlgmr.msra.gmra.mrb[16].mxu0 %vm411_vm2, %v654_v3 }
 0x1dd   :  { %v527_v8 = vadd.f32 %v1884_v43, %v526_v6  ;;  %v1340_v9 = vpop.f32.mrb[26].mxu1 }
 0x1de   :  { %1500 = vtanh.f32 %v535_v5  ;;  %v538_v10 = vadd.f32 %v1340_v9, %v1884_v43  ;;  %v529_v11 = vpop.f32.mrb[27].mxu1 }
 0x1df   :  { %1502 = vtanh.f32 %v527_v8  ;;  %v530_v12 = vadd.f32 %v1884_v43, %v529_v11  ;;  %v1493_v13 = vpop.eup %1492 }
 0x1e0   :  { %1504 = vtanh.f32 %v538_v10  ;;  %v1495_v14 = vpop.eup %1494 }
 0x1e1   :  { %1506 = vtanh.f32 %v530_v12  ;;  %v1497_v15 = vpop.eup %1496 }
 0x1e2   :  { %v1499_v16 = vpop.eup %1498  ;;  %v656_v18 = vpack.c.bf16 %v1497_v15, %v1493_v13 }
 0x1e3   :  { %v1343_v17 = vpop.f32.mrb[28].mxu1  ;;  %v655_v21 = vpack.c.bf16 %v1499_v16, %v1495_v14 }
 0x1e4   :  { %v551_v19 = vadd.f32 %v1343_v17, %v1884_v43  ;;  %v542_v20 = vpop.f32.mrb[29].mxu1 }
 0x1e5   :  { %v543_v22 = vadd.f32 %v1884_v43, %v542_v20  ;;  %v1344_v23 = vpop.f32.mrb[30].mxu1  ;;  %1373 = vmatprep.mubr.msk.bf16.mxu0 %vm411_vm2, %v655_v21 }
 0x1e6   :  { %1508 = vtanh.f32 %v551_v19  ;;  %v554_v24 = vadd.f32 %v1344_v23, %v1884_v43  ;;  %v545_v25 = vpop.f32.mrb[31].mxu1  ;;  %1374 = vmatmul.mubr.msk.bf16.gmra.mrb[20].mxu0 %vm411_vm2, %v656_v18 }
 0x1e7   :  { %1510 = vtanh.f32 %v543_v22  ;;  %v546_v26 = vadd.f32 %v1884_v43, %v545_v25 }
 0x1e8   :  { %v1501_v27 = vpop.eup %1500  ;;  %1512 = vtanh.f32 %v554_v24 }
 0x1e9   :  { %v1503_v28 = vpop.eup %1502  ;;  %1514 = vtanh.f32 %v546_v26 }
 0x1ea   :  { %v1505_v29 = vpop.eup %1504 }
 0x1eb   :  { %v1507_v30 = vpop.eup %1506  ;;  %v1347_v31 = vpop.f32.mrb[32].mxu1  ;;  %v658_v32 = vpack.c.bf16 %v1505_v29, %v1501_v27 }
 0x1ec   :  { %v567_v58 = vadd.f32 %v1347_v31, %v1884_v43  ;;  %v558_v33 = vpop.f32.mrb[33].mxu1  ;;  %v657_v35 = vpack.c.bf16 %v1507_v30, %v1503_v28  ;;  %v14_v31 = vstv %s2211_s8 }
 0x1ed   :  { %v559_v36 = vadd.f32 %v1884_v43, %v558_v33  ;;  %v1348_v37 = vpop.f32.mrb[34].mxu1  ;;  %15 = vst [vmem:[#allocation2] sm:$0x1] %v14_v31 }
 0x1ee   :  { %1516 = vtanh.f32 %v567_v58  ;;  %v570_v38 = vadd.f32 %v1348_v37, %v1884_v43  ;;  %v561_v40 = vpop.f32.mrb[35].mxu1  ;;  %1377 = vmatprep.mubr.msk.bf16.mxu0 %vm411_vm2, %v657_v35 }
 0x1ef   :  { %1518 = vtanh.f32 %v559_v36  ;;  %v562_v41 = vadd.f32 %v1884_v43, %v561_v40  ;;  %1378 = vmatmul.mubr.msk.bf16.gmra.mrb[24].mxu0 %vm411_vm2, %v658_v32  ;;  %v1940_v32 = vld [vmem:[%s2212_s6] ss:$0 sm:$0xff] }
 0x1f0   :  { %v1509_v42 = vpop.eup %1508  ;;  %1520 = vtanh.f32 %v570_v38 }
 0x1f1   :  { %v1511_v44 = vpop.eup %1510  ;;  %1522 = vtanh.f32 %v562_v41 }
 0x1f2   :  { %v1513_v45 = vpop.eup %1512 }
 0x1f3   :  { %v1515_v39 = vpop.eup %1514  ;;  %v1351_v34 = vpop.f32.mrb[36].mxu1  ;;  %v660_v46 = vpack.c.bf16 %v1513_v45, %v1509_v42 }
 0x1f4   :  { %v583_v47 = vadd.f32 %v1351_v34, %v1884_v43  ;;  %v574_v48 = vpop.f32.mrb[37].mxu1  ;;  %v659_v49 = vpack.c.bf16 %v1515_v39, %v1511_v44 }
 0x1f5   :  { %v575_v50 = vadd.f32 %v1884_v43, %v574_v48  ;;  %v1352_v51 = vpop.f32.mrb[38].mxu1  ;;  %v1952_v48 = vld [vmem:[%s2213_s7] ss:$0 sm:$0xff] }
 0x1f6   :  { %1524 = vtanh.f32 %v583_v47  ;;  %v586_v52 = vadd.f32 %v1352_v51, %v1884_v43  ;;  %v577_v53 = vpop.f32.mrb[39].mxu1  ;;  %1381 = vmatprep.mubr.msk.bf16.mxu0 %vm411_vm2, %v659_v49 }
 0x1f7   :  { %1526 = vtanh.f32 %v575_v50  ;;  %v578_v54 = vadd.f32 %v1884_v43, %v577_v53  ;;  %1382 = vmatmul.mubr.msk.bf16.gmra.mrb[28].mxu0 %vm411_vm2, %v660_v46 }
 0x1f8   :  { %v1517_v55 = vpop.eup %1516  ;;  %1528 = vtanh.f32 %v586_v52 }
 0x1f9   :  { %v1519_v56 = vpop.eup %1518  ;;  %1530 = vtanh.f32 %v578_v54 }
 0x1fa   :  { %v1521_v57 = vpop.eup %1520 }
 0x1fb   :  { %v1523_v59 = vpop.eup %1522  ;;  %v1355_v60 = vpop.f32.mrb[40].mxu1  ;;  %v662_v61 = vpack.c.bf16 %v1521_v57, %v1517_v55 }
 0x1fc   :  { %v599_v62 = vadd.f32 %v1355_v60, %v1884_v43  ;;  %v590_v63 = vpop.f32.mrb[41].mxu1  ;;  %v661_v0 = vpack.c.bf16 %v1523_v59, %v1519_v56 }
 0x1fd   :  { %v591_v1 = vadd.f32 %v1884_v43, %v590_v63  ;;  %v1356_v2 = vpop.f32.mrb[42].mxu1 }
 0x1fe   :  { %1532 = vtanh.f32 %v599_v62  ;;  %v602_v3 = vadd.f32 %v1356_v2, %v1884_v43  ;;  %v593_v4 = vpop.f32.mrb[43].mxu1  ;;  %1385 = vmatprep.mubr.msk.bf16.mxu0 %vm411_vm2, %v661_v0 }
 0x1ff   :  { %1534 = vtanh.f32 %v591_v1  ;;  %v594_v5 = vadd.f32 %v1884_v43, %v593_v4  ;;  %1386 = vmatmul.mubr.msk.bf16.gmra.mrb[32].mxu0 %vm411_vm2, %v662_v61 }
 0x200   :  { %v1525_v6 = vpop.eup %1524  ;;  %1536 = vtanh.f32 %v602_v3 }
 0x201   :  { %v1527_v7 = vpop.eup %1526  ;;  %1538 = vtanh.f32 %v594_v5 }
 0x202   :  { %v1529_v8 = vpop.eup %1528 }
 0x203   :  { %v1531_v9 = vpop.eup %1530  ;;  %v1359_v10 = vpop.f32.mrb[44].mxu1  ;;  %v664_v11 = vpack.c.bf16 %v1529_v8, %v1525_v6 }
 0x204   :  { %v615_v12 = vadd.f32 %v1359_v10, %v1884_v43  ;;  %v606_v13 = vpop.f32.mrb[45].mxu1  ;;  %v663_v14 = vpack.c.bf16 %v1531_v9, %v1527_v7 }
 0x205   :  { %v607_v15 = vadd.f32 %v1884_v43, %v606_v13  ;;  %v1360_v16 = vpop.f32.mrb[46].mxu1 }
 0x206   :  { %1540 = vtanh.f32 %v615_v12  ;;  %v618_v17 = vadd.f32 %v1360_v16, %v1884_v43  ;;  %v609_v18 = vpop.f32.mrb[47].mxu1  ;;  %1389 = vmatprep.mubr.msk.bf16.mxu0 %vm411_vm2, %v663_v14 }
 0x207   :  { %1542 = vtanh.f32 %v607_v15  ;;  %v610_v19 = vadd.f32 %v1884_v43, %v609_v18  ;;  %1390 = vmatmul.mubr.msk.bf16.gmra.mrb[36].mxu0 %vm411_vm2, %v664_v11 }
 0x208   :  { %v1533_v20 = vpop.eup %1532  ;;  %1544 = vtanh.f32 %v618_v17 }
 0x209   :  { %v1535_v21 = vpop.eup %1534  ;;  %1546 = vtanh.f32 %v610_v19 }
 0x20a   :  { %v1537_v22 = vpop.eup %1536 }
 0x20b   :  { %v1539_v23 = vpop.eup %1538  ;;  %v666_v24 = vpack.c.bf16 %v1537_v22, %v1533_v20 }
 0x20c   :  { %v665_v25 = vpack.c.bf16 %v1539_v23, %v1535_v21 }
 0x20e   :  { %1393 = vmatprep.mubr.msk.bf16.mxu0 %vm411_vm2, %v665_v25 }
 0x20f   :  { %1394 = vmatmul.mubr.msk.bf16.gmra.mrb[40].mxu0 %vm411_vm2, %v666_v24 }
 0x210   :  { %v1541_v26 = vpop.eup %1540 }
 0x211   :  { %v1543_v27 = vpop.eup %1542 }
 0x212   :  { %v1545_v28 = vpop.eup %1544 }
 0x213   :  { %v1547_v29 = vpop.eup %1546  ;;  %v668_v30 = vpack.c.bf16 %v1545_v28, %v1541_v26 }
 0x214   :  { %v667_v43 = vpack.c.bf16 %v1547_v29, %v1543_v27 }
 0x216   :  { %1397 = vmatprep.mubr.msk.bf16.mxu0 %vm411_vm2, %v667_v43 }
 0x217   :  { %1398 = vmatmul.mubr.msk.bf16.gmra.mrb[44].mxu0 %vm411_vm2, %v668_v30 }
 0x2af   :  { %v1371_v58 = vpop.f32.mrb[16].mxu0 }
 0x2b0   :  { %v799_v33 = vadd.f32 %v1371_v58, %v1940_v32  ;;  %v790_v35 = vpop.f32.mrb[17].mxu0 }
 0x2b1   :  { %v791_v36 = vadd.f32 %v1940_v32, %v790_v35  ;;  %v1372_v37 = vpop.f32.mrb[18].mxu0 }
 0x2b2   :  { %1548 = vtanh.f32 %v799_v33  ;;  %v802_v38 = vadd.f32 %v1372_v37, %v1940_v32  ;;  %v793_v40 = vpop.f32.mrb[19].mxu0 }
 0x2b3   :  { %1550 = vtanh.f32 %v791_v36  ;;  %v794_v41 = vadd.f32 %v1940_v32, %v793_v40 }
 0x2b4   :  { %1552 = vtanh.f32 %v802_v38 }
 0x2b5   :  { %1554 = vtanh.f32 %v794_v41 }
 0x2b9   :  { %v1375_v42 = vpop.f32.mrb[20].mxu0 }
 0x2ba   :  { %v815_v44 = vadd.f32 %v1375_v42, %v1940_v32  ;;  %v806_v45 = vpop.f32.mrb[21].mxu0 }
 0x2bb   :  { %v807_v39 = vadd.f32 %v1940_v32, %v806_v45  ;;  %v1376_v34 = vpop.f32.mrb[22].mxu0 }
 0x2bc   :  { %1556 = vtanh.f32 %v815_v44  ;;  %v818_v46 = vadd.f32 %v1376_v34, %v1940_v32  ;;  %v809_v47 = vpop.f32.mrb[23].mxu0  ;;  %v1549_v50 = vpop.eup %1548 }
 0x2bd   :  { %1558 = vtanh.f32 %v807_v39  ;;  %v810_v49 = vadd.f32 %v1940_v32, %v809_v47  ;;  %v1551_v51 = vpop.eup %1550  ;;  %v958_v52 = vmul.f32 %v1549_v50, %v1952_v48 }
 0x2be   :  { %1560 = vtanh.f32 %v818_v46  ;;  %v1553_v53 = vpop.eup %1552  ;;  %v956_v54 = vmul.f32 %v1551_v51, %v1952_v48 }
 0x2bf   :  { %1562 = vtanh.f32 %v810_v49  ;;  %v1555_v55 = vpop.eup %1554  ;;  %v994_v57 = vsel %vm411_vm2, %v958_v52, 0.0  ;;  %v959_v59 = vmul.f32 %v1553_v53, %v1952_v48 }
 0x2c0   :  { %995 = vadd.xlane.f32.xlu1 %v994_v57  ;;  %v988_v62 = vsel %vm411_vm2, %v956_v54, 0.0  ;;  %v957_v63 = vmul.f32 %v1555_v55, %v1952_v48 }
 0x2c1   :  { %989 = vadd.xlane.f32.xlu0 %v988_v62  ;;  %v997_v5 = vsel %vm411_vm2, %v959_v59, 0.0 }
 0x2c2   :  { %v1379_v56 = vpop.f32.mrb[24].mxu0  ;;  %v991_v7 = vsel %vm411_vm2, %v957_v63, 0.0 }
 0x2c3   :  { %v831_v60 = vadd.f32 %v1379_v56, %v1940_v32  ;;  %v822_v61 = vpop.f32.mrb[25].mxu0 }
 0x2c4   :  { %v823_v0 = vadd.f32 %v1940_v32, %v822_v61  ;;  %v1380_v1 = vpop.f32.mrb[26].mxu0  ;;  %998 = vadd.xlane.f32.xlu1 %v997_v5 }
 0x2c5   :  { %1564 = vtanh.f32 %v831_v60  ;;  %v834_v2 = vadd.f32 %v1380_v1, %v1940_v32  ;;  %v825_v3 = vpop.f32.mrb[27].mxu0  ;;  %992 = vadd.xlane.f32.xlu0 %v991_v7 }
 0x2c6   :  { %1566 = vtanh.f32 %v823_v0  ;;  %v826_v4 = vadd.f32 %v1940_v32, %v825_v3  ;;  %v1557_v6 = vpop.eup %1556 }
 0x2c7   :  { %1568 = vtanh.f32 %v834_v2  ;;  %v1559_v8 = vpop.eup %1558  ;;  %v962_v9 = vmul.f32 %v1557_v6, %v1952_v48 }
 0x2c8   :  { %1570 = vtanh.f32 %v826_v4  ;;  %v1561_v10 = vpop.eup %1560  ;;  %v960_v17 = vmul.f32 %v1559_v8, %v1952_v48 }
 0x2c9   :  { %v1563_v11 = vpop.eup %1562  ;;  %v1006_v13 = vsel %vm411_vm2, %v962_v9, 0.0  ;;  %v963_v14 = vmul.f32 %v1561_v10, %v1952_v48 }
 0x2ca   :  { %v1383_v12 = vpop.f32.mrb[28].mxu0  ;;  %1007 = vadd.xlane.f32.xlu0 %v1006_v13  ;;  %v961_v21 = vmul.f32 %v1563_v11, %v1952_v48  ;;  %v1000_v26 = vsel %vm411_vm2, %v960_v17, 0.0 }
 0x2cb   :  { %v847_v15 = vadd.f32 %v1383_v12, %v1940_v32  ;;  %v838_v16 = vpop.f32.mrb[29].mxu0  ;;  %v1009_v20 = vsel %vm411_vm2, %v963_v14, 0.0 }
 0x2cc   :  { %v839_v18 = vadd.f32 %v1940_v32, %v838_v16  ;;  %v1384_v19 = vpop.f32.mrb[30].mxu0  ;;  %1010 = vadd.xlane.f32.xlu1 %v1009_v20  ;;  %v1003_v28 = vsel %vm411_vm2, %v961_v21, 0.0 }
 0x2cd   :  { %1572 = vtanh.f32 %v847_v15  ;;  %v850_v22 = vadd.f32 %v1384_v19, %v1940_v32  ;;  %v841_v23 = vpop.f32.mrb[31].mxu0 }
 0x2ce   :  { %1574 = vtanh.f32 %v839_v18  ;;  %v842_v24 = vadd.f32 %v1940_v32, %v841_v23  ;;  %1001 = vadd.xlane.f32.xlu0 %v1000_v26 }
 0x2cf   :  { %v1565_v25 = vpop.eup %1564  ;;  %1576 = vtanh.f32 %v850_v22 }
 0x2d0   :  { %v1567_v27 = vpop.eup %1566  ;;  %1578 = vtanh.f32 %v842_v24  ;;  %v966_v29 = vmul.f32 %v1565_v25, %v1952_v48  ;;  %1004 = vadd.xlane.f32.xlu1 %v1003_v28 }
 0x2d1   :  { %v1569_v30 = vpop.eup %1568  ;;  %v964_v37 = vmul.f32 %v1567_v27, %v1952_v48 }
 0x2d2   :  { %v1571_v43 = vpop.eup %1570  ;;  %v1387_v31 = vpop.f32.mrb[32].mxu0  ;;  %v1018_v58 = vsel %vm411_vm2, %v966_v29, 0.0  ;;  %v967_v33 = vmul.f32 %v1569_v30, %v1952_v48 }
 0x2d3   :  { %v863_v35 = vadd.f32 %v1387_v31, %v1940_v32  ;;  %v854_v36 = vpop.f32.mrb[33].mxu0  ;;  %1019 = vadd.xlane.f32.xlu0 %v1018_v58  ;;  %v965_v42 = vmul.f32 %v1571_v43, %v1952_v48  ;;  %v1012_v46 = vsel %vm411_vm2, %v964_v37, 0.0 }
 0x2d4   :  { %v855_v38 = vadd.f32 %v1940_v32, %v854_v36  ;;  %v1388_v40 = vpop.f32.mrb[34].mxu0  ;;  %v1021_v41 = vsel %vm411_vm2, %v967_v33, 0.0 }
 0x2d5   :  { %1580 = vtanh.f32 %v863_v35  ;;  %v866_v44 = vadd.f32 %v1388_v40, %v1940_v32  ;;  %v857_v45 = vpop.f32.mrb[35].mxu0  ;;  %1022 = vadd.xlane.f32.xlu1 %v1021_v41  ;;  %v1015_v49 = vsel %vm411_vm2, %v965_v42, 0.0 }
 0x2d6   :  { %1582 = vtanh.f32 %v855_v38  ;;  %v858_v39 = vadd.f32 %v1940_v32, %v857_v45 }
 0x2d7   :  { %v1573_v34 = vpop.eup %1572  ;;  %1584 = vtanh.f32 %v866_v44  ;;  %1013 = vadd.xlane.f32.xlu0 %v1012_v46 }
 0x2d8   :  { %v1575_v47 = vpop.eup %1574  ;;  %1586 = vtanh.f32 %v858_v39  ;;  %v970_v50 = vmul.f32 %v1573_v34, %v1952_v48 }
 0x2d9   :  { %v1577_v51 = vpop.eup %1576  ;;  %1016 = vadd.xlane.f32.xlu1 %v1015_v49  ;;  %v968_v59 = vmul.f32 %v1575_v47, %v1952_v48 }
 0x2da   :  { %v1579_v52 = vpop.eup %1578  ;;  %v1391_v53 = vpop.f32.mrb[36].mxu0  ;;  %v1030_v54 = vsel %vm411_vm2, %v970_v50, 0.0  ;;  %v971_v55 = vmul.f32 %v1577_v51, %v1952_v48 }
 0x2db   :  { %v879_v56 = vadd.f32 %v1391_v53, %v1940_v32  ;;  %v870_v57 = vpop.f32.mrb[37].mxu0  ;;  %1031 = vadd.xlane.f32.xlu0 %v1030_v54  ;;  %v969_v63 = vmul.f32 %v1579_v52, %v1952_v48  ;;  %v1024_v4 = vsel %vm411_vm2, %v968_v59, 0.0 }
 0x2dc   :  { %v871_v60 = vadd.f32 %v1940_v32, %v870_v57  ;;  %v1392_v61 = vpop.f32.mrb[38].mxu0  ;;  %v1033_v62 = vsel %vm411_vm2, %v971_v55, 0.0 }
 0x2dd   :  { %1588 = vtanh.f32 %v879_v56  ;;  %v882_v0 = vadd.f32 %v1392_v61, %v1940_v32  ;;  %v873_v1 = vpop.f32.mrb[39].mxu0  ;;  %1034 = vadd.xlane.f32.xlu1 %v1033_v62  ;;  %v1027_v6 = vsel %vm411_vm2, %v969_v63, 0.0 }
 0x2de   :  { %1590 = vtanh.f32 %v871_v60  ;;  %v874_v2 = vadd.f32 %v1940_v32, %v873_v1 }
 0x2df   :  { %v1581_v3 = vpop.eup %1580  ;;  %1592 = vtanh.f32 %v882_v0  ;;  %1025 = vadd.xlane.f32.xlu0 %v1024_v4 }
 0x2e0   :  { %v1583_v5 = vpop.eup %1582  ;;  %1594 = vtanh.f32 %v874_v2  ;;  %v974_v7 = vmul.f32 %v1581_v3, %v1952_v48 }
 0x2e1   :  { %v1585_v8 = vpop.eup %1584  ;;  %1028 = vadd.xlane.f32.xlu1 %v1027_v6  ;;  %v972_v15 = vmul.f32 %v1583_v5, %v1952_v48  ;;  %v2043_v6 = vld [vmem:[#allocation2] ss:$0 sm:$0xff] }
 0x2e2   :  { %v1587_v9 = vpop.eup %1586  ;;  %v1395_v10 = vpop.f32.mrb[40].mxu0  ;;  %v1042_v11 = vsel %vm411_vm2, %v974_v7, 0.0  ;;  %v975_v12 = vmul.f32 %v1585_v8, %v1952_v48 }
 0x2e3   :  { %v895_v13 = vadd.f32 %v1395_v10, %v1940_v32  ;;  %v886_v14 = vpop.f32.mrb[41].mxu0  ;;  %1043 = vadd.xlane.f32.xlu0 %v1042_v11  ;;  %v973_v19 = vmul.f32 %v1587_v9, %v1952_v48  ;;  %v1036_v24 = vsel %vm411_vm2, %v972_v15, 0.0 }
 0x2e4   :  { %v887_v16 = vadd.f32 %v1940_v32, %v886_v14  ;;  %v1396_v17 = vpop.f32.mrb[42].mxu0  ;;  %v1045_v18 = vsel %vm411_vm2, %v975_v12, 0.0 }
 0x2e5   :  { %1596 = vtanh.f32 %v895_v13  ;;  %v898_v20 = vadd.f32 %v1396_v17, %v1940_v32  ;;  %v889_v21 = vpop.f32.mrb[43].mxu0  ;;  %1046 = vadd.xlane.f32.xlu1 %v1045_v18  ;;  %v1039_v26 = vsel %vm411_vm2, %v973_v19, 0.0 }
 0x2e6   :  { %1598 = vtanh.f32 %v887_v16  ;;  %v890_v22 = vadd.f32 %v1940_v32, %v889_v21 }
 0x2e7   :  { %v1589_v23 = vpop.eup %1588  ;;  %1600 = vtanh.f32 %v898_v20  ;;  %1037 = vadd.xlane.f32.xlu0 %v1036_v24 }
 0x2e8   :  { %v1591_v25 = vpop.eup %1590  ;;  %1602 = vtanh.f32 %v890_v22  ;;  %v978_v27 = vmul.f32 %v1589_v23, %v1952_v48 }
 0x2e9   :  { %v1593_v28 = vpop.eup %1592  ;;  %1040 = vadd.xlane.f32.xlu1 %v1039_v26  ;;  %v976_v35 = vmul.f32 %v1591_v25, %v1952_v48 }
 0x2ea   :  { %v1595_v29 = vpop.eup %1594  ;;  %v1399_v30 = vpop.f32.mrb[44].mxu0  ;;  %v1054_v43 = vsel %vm411_vm2, %v978_v27, 0.0  ;;  %v979_v31 = vmul.f32 %v1593_v28, %v1952_v48 }
 0x2eb   :  { %v911_v58 = vadd.f32 %v1399_v30, %v1940_v32  ;;  %v902_v33 = vpop.f32.mrb[45].mxu0  ;;  %1055 = vadd.xlane.f32.xlu0 %v1054_v43  ;;  %v977_v40 = vmul.f32 %v1595_v29, %v1952_v48  ;;  %v1048_v39 = vsel %vm411_vm2, %v976_v35, 0.0 }
 0x2ec   :  { %v903_v36 = vadd.f32 %v1940_v32, %v902_v33  ;;  %v1400_v37 = vpop.f32.mrb[46].mxu0  ;;  %v1057_v38 = vsel %vm411_vm2, %v979_v31, 0.0 }
 0x2ed   :  { %1604 = vtanh.f32 %v911_v58  ;;  %v914_v41 = vadd.f32 %v1400_v37, %v1940_v32  ;;  %v905_v42 = vpop.f32.mrb[47].mxu0  ;;  %1058 = vadd.xlane.f32.xlu1 %v1057_v38  ;;  %v1051_v46 = vsel %vm411_vm2, %v977_v40, 0.0 }
 0x2ee   :  { %1606 = vtanh.f32 %v903_v36  ;;  %v906_v44 = vadd.f32 %v1940_v32, %v905_v42 }
 0x2ef   :  { %v1597_v45 = vpop.eup %1596  ;;  %1608 = vtanh.f32 %v914_v41  ;;  %1049 = vadd.xlane.f32.xlu0 %v1048_v39 }
 0x2f0   :  { %v1599_v34 = vpop.eup %1598  ;;  %1610 = vtanh.f32 %v906_v44  ;;  %v982_v47 = vmul.f32 %v1597_v45, %v1952_v48 }
 0x2f1   :  { %v1601_v49 = vpop.eup %1600  ;;  %1052 = vadd.xlane.f32.xlu1 %v1051_v46  ;;  %v980_v32 = vmul.f32 %v1599_v34, %v1952_v48 }
 0x2f2   :  { %v1603_v50 = vpop.eup %1602  ;;  %v1066_v51 = vsel %vm411_vm2, %v982_v47, 0.0  ;;  %v983_v52 = vmul.f32 %v1601_v49, %v1952_v48 }
 0x2f3   :  { %1067 = vadd.xlane.f32.xlu0 %v1066_v51  ;;  %v981_v54 = vmul.f32 %v1603_v50, %v1952_v48  ;;  %v1060_v56 = vsel %vm411_vm2, %v980_v32, 0.0 }
 0x2f4   :  { %v1069_v53 = vsel %vm411_vm2, %v983_v52, 0.0 }
 0x2f5   :  { %1070 = vadd.xlane.f32.xlu1 %v1069_v53  ;;  %v1063_v59 = vsel %vm411_vm2, %v981_v54, 0.0 }
 0x2f7   :  { %v1605_v55 = vpop.eup %1604  ;;  %1061 = vadd.xlane.f32.xlu0 %v1060_v56 }
 0x2f8   :  { %v1607_v57 = vpop.eup %1606  ;;  %v986_v1 = vmul.f32 %v1605_v55, %v1952_v48 }
 0x2f9   :  { %v1609_v60 = vpop.eup %1608  ;;  %1064 = vadd.xlane.f32.xlu1 %v1063_v59  ;;  %v984_v61 = vmul.f32 %v1607_v57, %v1952_v48 }
 0x2fa   :  { %v1611_v62 = vpop.eup %1610  ;;  %v987_v3 = vmul.f32 %v1609_v60, %v1952_v48  ;;  %v1078_v4 = vsel %vm411_vm2, %v986_v1, 0.0 }
 0x2fb   :  { %v1072_v63 = vsel %vm411_vm2, %v984_v61, 0.0  ;;  %v985_v0 = vmul.f32 %v1611_v62, %v1952_v48 }
 0x2fc   :  { %1073 = vadd.xlane.f32.xlu0 %v1072_v63  ;;  %v1081_v5 = vsel %vm411_vm2, %v987_v3, 0.0 }
 0x2fd   :  { %v1075_v2 = vsel %vm411_vm2, %v985_v0, 0.0 }
 0x2fe   :  { %1076 = vadd.xlane.f32.xlu1 %v1075_v2 }
 0x300   :  { %1079 = vadd.xlane.f32.xlu0 %v1078_v4 }
 0x302   :  { %1082 = vadd.xlane.f32.xlu1 %v1081_v5 }
 0x34d   :  { %v996_v7 = vpop.xlane.xlu1 %995 }
 0x34e   :  { %v1093_v8 = vadd.f32 %v2043_v6, %v996_v7  ;;  %v990_v9 = vpop.xlane.xlu0 %989 }
 0x34f   :  { %v1091_v10 = vadd.f32 %v2043_v6, %v990_v9 }
 0x350   :  { %1126 = vst.msk [vmem:[%s2214_s9 + $0x10] sm:$0xff] %vm1123_vm3, %v1093_v8 }
 0x351   :  { %1124 = vst.msk [vmem:[%s2214_s9] sm:$0xff] %vm1123_vm3, %v1091_v10  ;;  %v999_v48 = vpop.xlane.xlu1 %998 }
 0x352   :  { %v1094_v11 = vadd.f32 %v2043_v6, %v999_v48  ;;  %v993_v12 = vpop.xlane.xlu0 %992 }
 0x353   :  { %v1092_v13 = vadd.f32 %v2043_v6, %v993_v12 }
 0x354   :  { %1127 = vst.msk [vmem:[%s2214_s9 + $0x18] sm:$0xff] %vm1123_vm3, %v1094_v11 }
 0x355   :  { %1125 = vst.msk [vmem:[%s2214_s9 + $0x8] sm:$0xff] %vm1123_vm3, %v1092_v13 }
 0x357   :  { %v1008_v14 = vpop.xlane.xlu0 %1007 }
 0x358   :  { %v1097_v15 = vadd.f32 %v2043_v6, %v1008_v14 }
 0x359   :  { %v1011_v16 = vpop.xlane.xlu1 %1010 }
 0x35a   :  { %v1098_v17 = vadd.f32 %v2043_v6, %v1011_v16  ;;  %1130 = vst.msk [vmem:[%s2214_s9 + $0x30] sm:$0xff] %vm1123_vm3, %v1097_v15 }
 0x35b   :  { %v1002_v18 = vpop.xlane.xlu0 %1001 }
 0x35c   :  { %1131 = vst.msk [vmem:[%s2214_s9 + $0x38] sm:$0xff] %vm1123_vm3, %v1098_v17  ;;  %v1095_v19 = vadd.f32 %v2043_v6, %v1002_v18 }
 0x35d   :  { %v1005_v20 = vpop.xlane.xlu1 %1004 }
 0x35e   :  { %v1096_v21 = vadd.f32 %v2043_v6, %v1005_v20  ;;  %1128 = vst.msk [vmem:[%s2214_s9 + $0x20] sm:$0xff] %vm1123_vm3, %v1095_v19 }
 0x360   :  { %1129 = vst.msk [vmem:[%s2214_s9 + $0x28] sm:$0xff] %vm1123_vm3, %v1096_v21  ;;  %v1020_v22 = vpop.xlane.xlu0 %1019 }
 0x361   :  { %v1101_v23 = vadd.f32 %v2043_v6, %v1020_v22 }
 0x362   :  { %v1023_v24 = vpop.xlane.xlu1 %1022 }
 0x363   :  { %v1102_v25 = vadd.f32 %v2043_v6, %v1023_v24  ;;  %1134 = vst.msk [vmem:[%s2214_s9 + $0x50] sm:$0xff] %vm1123_vm3, %v1101_v23 }
 0x364   :  { %v1014_v26 = vpop.xlane.xlu0 %1013 }
 0x365   :  { %1135 = vst.msk [vmem:[%s2214_s9 + $0x58] sm:$0xff] %vm1123_vm3, %v1102_v25  ;;  %v1099_v27 = vadd.f32 %v2043_v6, %v1014_v26 }
 0x366   :  { %v1017_v28 = vpop.xlane.xlu1 %1016 }
 0x367   :  { %v1100_v29 = vadd.f32 %v2043_v6, %v1017_v28  ;;  %1132 = vst.msk [vmem:[%s2214_s9 + $0x40] sm:$0xff] %vm1123_vm3, %v1099_v27 }
 0x368   :  { %v1032_v30 = vpop.xlane.xlu0 %1031 }
 0x369   :  { %1133 = vst.msk [vmem:[%s2214_s9 + $0x48] sm:$0xff] %vm1123_vm3, %v1100_v29  ;;  %v1105_v43 = vadd.f32 %v2043_v6, %v1032_v30 }
 0x36a   :  { %v1035_v31 = vpop.xlane.xlu1 %1034 }
 0x36b   :  { %v1106_v58 = vadd.f32 %v2043_v6, %v1035_v31  ;;  %1138 = vst.msk [vmem:[%s2214_s9 + $0x70] sm:$0xff] %vm1123_vm3, %v1105_v43 }
 0x36c   :  { %v1026_v33 = vpop.xlane.xlu0 %1025 }
 0x36d   :  { %1139 = vst.msk [vmem:[%s2214_s9 + $0x78] sm:$0xff] %vm1123_vm3, %v1106_v58  ;;  %v1103_v35 = vadd.f32 %v2043_v6, %v1026_v33 }
 0x36e   :  { %v1029_v36 = vpop.xlane.xlu1 %1028 }
 0x36f   :  { %v1104_v37 = vadd.f32 %v2043_v6, %v1029_v36  ;;  %1136 = vst.msk [vmem:[%s2214_s9 + $0x60] sm:$0xff] %vm1123_vm3, %v1103_v35 }
 0x370   :  { %v1044_v38 = vpop.xlane.xlu0 %1043 }
 0x371   :  { %1137 = vst.msk [vmem:[%s2214_s9 + $0x68] sm:$0xff] %vm1123_vm3, %v1104_v37  ;;  %v1109_v40 = vadd.f32 %v2043_v6, %v1044_v38 }
 0x372   :  { %v1047_v41 = vpop.xlane.xlu1 %1046 }
 0x373   :  { %v1110_v42 = vadd.f32 %v2043_v6, %v1047_v41  ;;  %1142 = vst.msk [vmem:[%s2214_s9 + $0x90] sm:$0xff] %vm1123_vm3, %v1109_v40 }
 0x374   :  { %v1038_v44 = vpop.xlane.xlu0 %1037 }
 0x375   :  { %1143 = vst.msk [vmem:[%s2214_s9 + $0x98] sm:$0xff] %vm1123_vm3, %v1110_v42  ;;  %v1107_v45 = vadd.f32 %v2043_v6, %v1038_v44 }
 0x376   :  { %v1041_v39 = vpop.xlane.xlu1 %1040 }
 0x377   :  { %v1108_v34 = vadd.f32 %v2043_v6, %v1041_v39  ;;  %1140 = vst.msk [vmem:[%s2214_s9 + $0x80] sm:$0xff] %vm1123_vm3, %v1107_v45 }
 0x378   :  { %v1056_v46 = vpop.xlane.xlu0 %1055 }
 0x379   :  { %1141 = vst.msk [vmem:[%s2214_s9 + $0x88] sm:$0xff] %vm1123_vm3, %v1108_v34  ;;  %v1113_v47 = vadd.f32 %v2043_v6, %v1056_v46 }
 0x37a   :  { %v1059_v49 = vpop.xlane.xlu1 %1058 }
 0x37b   :  { %v1114_v50 = vadd.f32 %v2043_v6, %v1059_v49  ;;  %1146 = vst.msk [vmem:[%s2214_s9 + $0xb0] sm:$0xff] %vm1123_vm3, %v1113_v47 }
 0x37c   :  { %v1050_v51 = vpop.xlane.xlu0 %1049 }
 0x37d   :  { %1147 = vst.msk [vmem:[%s2214_s9 + $0xb8] sm:$0xff] %vm1123_vm3, %v1114_v50  ;;  %v1111_v52 = vadd.f32 %v2043_v6, %v1050_v51 }
 0x37e   :  { %v1053_v32 = vpop.xlane.xlu1 %1052 }
 0x37f   :  { %v1112_v53 = vadd.f32 %v2043_v6, %v1053_v32  ;;  %1144 = vst.msk [vmem:[%s2214_s9 + $0xa0] sm:$0xff] %vm1123_vm3, %v1111_v52 }
 0x380   :  { %v1068_v54 = vpop.xlane.xlu0 %1067 }
 0x381   :  { %1145 = vst.msk [vmem:[%s2214_s9 + $0xa8] sm:$0xff] %vm1123_vm3, %v1112_v53  ;;  %v1117_v55 = vadd.f32 %v2043_v6, %v1068_v54 }
 0x382   :  { %v1071_v56 = vpop.xlane.xlu1 %1070 }
 0x383   :  { %v1118_v57 = vadd.f32 %v2043_v6, %v1071_v56  ;;  %1150 = vst.msk [vmem:[%s2214_s9 + $0xd0] sm:$0xff] %vm1123_vm3, %v1117_v55 }
 0x384   :  { %v1062_v59 = vpop.xlane.xlu0 %1061 }
 0x385   :  { %1151 = vst.msk [vmem:[%s2214_s9 + $0xd8] sm:$0xff] %vm1123_vm3, %v1118_v57  ;;  %v1115_v60 = vadd.f32 %v2043_v6, %v1062_v59 }
 0x386   :  { %v1065_v61 = vpop.xlane.xlu1 %1064 }
 0x387   :  { %v1116_v62 = vadd.f32 %v2043_v6, %v1065_v61  ;;  %1148 = vst.msk [vmem:[%s2214_s9 + $0xc0] sm:$0xff] %vm1123_vm3, %v1115_v60 }
 0x389   :  { %1149 = vst.msk [vmem:[%s2214_s9 + $0xc8] sm:$0xff] %vm1123_vm3, %v1116_v62  ;;  %v1074_v63 = vpop.xlane.xlu0 %1073 }
 0x38a   :  { %v1119_v0 = vadd.f32 %v2043_v6, %v1074_v63 }
 0x38b   :  { %v1077_v1 = vpop.xlane.xlu1 %1076 }
 0x38c   :  { %1152 = vst.msk [vmem:[%s2214_s9 + $0xe0] sm:$0xff] %vm1123_vm3, %v1119_v0  ;;  %v1120_v2 = vadd.f32 %v2043_v6, %v1077_v1 }
 0x38d   :  { %v1080_v3 = vpop.xlane.xlu0 %1079 }
 0x38e   :  { %1153 = vst.msk [vmem:[%s2214_s9 + $0xe8] sm:$0xff] %vm1123_vm3, %v1120_v2  ;;  %v1121_v4 = vadd.f32 %v2043_v6, %v1080_v3 }
 0x38f   :  { %v1083_v5 = vpop.xlane.xlu1 %1082 }
 0x390   :  { %1154 = vst.msk [vmem:[%s2214_s9 + $0xf0] sm:$0xff] %vm1123_vm3, %v1121_v4  ;;  %v1122_v7 = vadd.f32 %v2043_v6, %v1083_v5 }
 0x392   :  { %1155 = vst.msk [vmem:[%s2214_s9 + $0xf8] sm:$0xff] %vm1123_vm3, %v1122_v7 }

</bundles_post_ra>
